<compile_context>
chip_gen: v7x
topology: tpu7x:2x2x1
jax: 0.10.0
libtpu: 0.0.40
codegen_flags: <defaults>
</compile_context>

<pallas_src>
import functools

import jax
import jax.numpy as jnp
from jax.experimental import pallas as pl
from jax.experimental.pallas import tpu as pltpu


# ---------------------------------------------------------------------------
# Pass 1: conv1 -> Res2 chain -> conv2 on one halo'd T-tile; accumulate SE sums.
# ---------------------------------------------------------------------------
def _pass1_kernel(xw_ref,
                  w1_ref, b1_ref, s1_ref, t1_ref,          # Conv1dReluBn #1 (k=1)
                  w2_ref, b2_ref, s2_ref, t2_ref,          # Res2Conv1dReluBn (taps fused)
                  w3_ref, b3_ref, s3_ref, t3_ref,          # Conv1dReluBn #2 (k=1)
                  h3_ref, sum_ref,                          # outputs
                  pad_ref, h2_ref,                          # VMEM scratch (bf16)
                  *, scale, kernel_size, dilation, padding, halo, t_tile, t_total):
    ti = pl.program_id(1)
    Lw = t_tile + 2 * halo                                  # halo'd tile extent
    C = xw_ref.shape[-1]
    width = C // scale
    nums = scale if scale == 1 else scale - 1
    K, d, p = kernel_size, dilation, padding
    c0 = halo                                               # start of valid center rows

    # Validity mask: zero rows outside the true sequence [0, T) -- this reproduces
    # the zero padding of every Res2 conv and masks the padded-T tail of the last tile.
    t0 = ti * t_tile - halo
    gidx = jax.lax.broadcasted_iota(jnp.int32, (Lw, 1), 0) + t0
    vmask = ((gidx >= 0) & (gidx < t_total)).astype(jnp.float32)

    # ---- Conv1dReluBn #1 (pointwise), recomputed over the halo rows ----
    xw = xw_ref[0, 0]                                       # (Lw, C) bf16
    h = jnp.dot(xw, w1_ref[...], preferred_element_type=jnp.float32) + b1_ref[...]
    h = (jnp.maximum(h, 0.0) * s1_ref[...] + t1_ref[...]) * vmask   # (Lw, C) f32

    # ---- Res2Conv1dReluBn: sequential group chain, K taps fused into one matmul ----
    if p > 0:                                               # zero only the filler rows
        zer = jnp.zeros((p, width), pad_ref.dtype)
        pad_ref[pl.ds(0, p), :] = zer
        pad_ref[pl.ds(p + Lw, p), :] = zer

    sp = h[:, 0:width]
    for g in range(nums):                                   # static loop (data dependent)
        if g >= 1:
            sp = sp + h[:, g * width:(g + 1) * width]
        pad_ref[pl.ds(p, Lw), :] = sp.astype(pad_ref.dtype)
        slab = jnp.concatenate(
            [pad_ref[pl.ds(k * d, Lw), :] for k in range(K)], axis=1)   # (Lw, K*width) bf16
        acc = jnp.dot(slab, w2_ref[g], preferred_element_type=jnp.float32) + b2_ref[g]
        sp = (jnp.maximum(acc, 0.0) * s2_ref[g] + t2_ref[g]) * vmask    # (Lw, width) f32
        h2_ref[:, g * width:(g + 1) * width] = sp[c0:c0 + t_tile].astype(h2_ref.dtype)
    if scale != 1:                                          # passthrough group
        h2_ref[:, nums * width:] = h[c0:c0 + t_tile, nums * width:].astype(h2_ref.dtype)

    # ---- Conv1dReluBn #2: one (tT, C) x (C, C) matmul on the bf16 scratch ----
    h3 = jnp.dot(h2_ref[...], w3_ref[...], preferred_element_type=jnp.float32) + b3_ref[...]
    h3 = (jnp.maximum(h3, 0.0) * s3_ref[...] + t3_ref[...]) * vmask[c0:c0 + t_tile]
    h3b = h3.astype(jnp.bfloat16)
    h3_ref[0] = h3b

    # ---- SE channel-sum accumulation across T tiles (ones-row MXU matmul) ----
    part = jnp.dot(jnp.ones((1, t_tile), jnp.bfloat16), h3b,
                   preferred_element_type=jnp.float32)       # (1, C) f32

    @pl.when(ti == 0)
    def _init():
        sum_ref[...] = jnp.zeros_like(sum_ref)

    sum_ref[0] = sum_ref[0] + part


# ---------------------------------------------------------------------------
# Pass 2: SE gate from the channel sums, then gate + residual (elementwise).
# ---------------------------------------------------------------------------
def _pass2_kernel(x_ref, h3_ref, sum_ref,
                  wse1_ref, bse1_ref, wse2_ref, bse2_ref,
                  o_ref, *, t_total):
    m = sum_ref[0] * (1.0 / t_total)                         # (1, C) f32
    a = jnp.maximum(
        jnp.dot(m.astype(jnp.bfloat16), wse1_ref[...],
                preferred_element_type=jnp.float32) + bse1_ref[...], 0.0)
    gate = jax.nn.sigmoid(
        jnp.dot(a.astype(jnp.bfloat16), wse2_ref[...],
                preferred_element_type=jnp.float32) + bse2_ref[...])     # (1, C)

    x = x_ref[0].astype(jnp.float32)
    h3 = h3_ref[0].astype(jnp.float32)
    o_ref[0] = (x + h3 * gate).astype(o_ref.dtype)


# ---------------------------------------------------------------------------
# Parameter folding (eval-mode BN) and kernel-layout staging.
# ---------------------------------------------------------------------------
def _fold_bn(gamma, beta, mean, var, eps=1e-5):
    s = gamma / jnp.sqrt(var + eps)
    return s, beta - mean * s


def _prepare_params(raw, *, scale, kernel_size):
    C = raw["c1_w"].shape[0]
    width = C // scale
    f32, bf16 = jnp.float32, jnp.bfloat16

    s1, t1 = _fold_bn(*raw["bn1"])
    s3, t3 = _fold_bn(*raw["bn3"])

    w1 = raw["c1_w"][:, :, 0].T.astype(bf16)                 # (C_in, C_out)
    w3 = raw["c3_w"][:, :, 0].T.astype(bf16)
    b1 = raw["c1_b"][None, :].astype(f32)
    b3 = raw["c3_b"][None, :].astype(f32)

    # Res2 tap weights, fused per group: (nums, K*width, width), rows = (tap, in_ch).
    w2 = jnp.stack([
        jnp.transpose(w, (2, 1, 0)).reshape(kernel_size * width, width)
        for w in raw["r_w"]]).astype(bf16)
    b2 = jnp.stack(raw["r_b"])[:, None, :].astype(f32)       # (nums, 1, width)
    folded = [_fold_bn(*bn) for bn in raw["r_bn"]]
    s2 = jnp.stack([s for s, _ in folded])[:, None, :].astype(f32)
    t2 = jnp.stack([t for _, t in folded])[:, None, :].astype(f32)

    wse1 = raw["se1_w"].T.astype(bf16)                       # (C, bottleneck)
    bse1 = raw["se1_b"][None, :].astype(f32)
    wse2 = raw["se2_w"].T.astype(bf16)                       # (bottleneck, C)
    bse2 = raw["se2_b"][None, :].astype(f32)

    conv_params = [w1, b1, s1[None, :].astype(f32), t1[None, :].astype(f32),
                   w2, b2, s2, t2,
                   w3, b3, s3[None, :].astype(f32), t3[None, :].astype(f32)]
    se_params = [wse1, bse1, wse2, bse2]
    return conv_params, se_params


def _clamp_vmem(need_bytes):
    try:
        cap = int(pltpu.get_tpu_info().vmem_capacity_bytes)   # 128 MiB v5e/v6e, 64 MiB v7x
    except Exception:
        cap = 64 << 20
    return int(max(16 << 20, min(int(need_bytes), int(cap * 0.85))))


# ---------------------------------------------------------------------------
# Wrappers.
# ---------------------------------------------------------------------------
def se_res2block_btc(x_btc, raw, *, scale, kernel_size, dilation, padding,
                     t_tile=256, out_dtype=None):
    """Primary (transpose-free) entry. x_btc: (B, T, C). Returns (B, T, C)."""
    assert 2 * padding == dilation * (kernel_size - 1), (
        "Res2 dilated conv must be same-length: 2*padding == dilation*(kernel_size-1)")
    B, T, C = x_btc.shape
    assert C % scale == 0
    width = C // scale
    nums = scale if scale == 1 else scale - 1
    halo = nums * padding                                    # receptive field of the chain
    out_dtype = x_btc.dtype if out_dtype is None else out_dtype

    if T <= t_tile:
        tT, nT = T, 1
    else:
        tT = max(8, (t_tile // 8) * 8)                       # sublane-aligned tile rows
        nT = -(-T // tT)
    Tpad = nT * tT
    Lw = tT + 2 * halo

    conv_params, se_params = _prepare_params(raw, scale=scale, kernel_size=kernel_size)

    # bf16 across the HBM boundary; windows carry the halo so tiles are independent.
    xb = x_btc.astype(jnp.bfloat16)
    xp = jnp.pad(xb, ((0, 0), (halo, halo + Tpad - T), (0, 0)))
    windows = jnp.stack([xp[:, i * tT:i * tT + Lw] for i in range(nT)],
                        axis=1)                              # (B, nT, Lw, C)

    def full_spec(arr):
        nd = arr.ndim
        return pl.BlockSpec(arr.shape, lambda b, t: (0,) * nd)

    kernel1 = functools.partial(_pass1_kernel, scale=scale, kernel_size=kernel_size,
                                dilation=dilation, padding=padding, halo=halo,
                                t_tile=tT, t_total=T)

    conv_bytes = sum(int(p.size) * p.dtype.itemsize for p in conv_params)
    need1 = (2 * Lw * C * 2                                  # windows block (2 bufs)
             + 2 * (tT * C * 2 + C * 4)                      # h3 + sums out blocks
             + 2 * conv_bytes                                # weights (2 bufs)
             + (Lw + 2 * padding) * width * 2 + tT * C * 2   # scratches
             + 12 * Lw * C * 4 + (8 << 20))                  # in-kernel temporaries

    h3, sums = pl.pallas_call(
        kernel1,
        out_shape=(jax.ShapeDtypeStruct((B, Tpad, C), jnp.bfloat16),
                   jax.ShapeDtypeStruct((B, 1, C), jnp.float32)),
        grid_spec=pltpu.PrefetchScalarGridSpec(
            num_scalar_prefetch=0,
            grid=(B, nT),
            in_specs=[pl.BlockSpec((1, 1, Lw, C), lambda b, t: (b, t, 0, 0))]
                     + [full_spec(p) for p in conv_params],
            out_specs=[pl.BlockSpec((1, tT, C), lambda b, t: (b, t, 0)),
                       pl.BlockSpec((1, 1, C), lambda b, t: (b, 0, 0))],
            scratch_shapes=[pltpu.VMEM((Lw + 2 * padding, width), jnp.bfloat16),
                            pltpu.VMEM((tT, C), jnp.bfloat16)]),
        compiler_params=pltpu.CompilerParams(
            dimension_semantics=("parallel", "arbitrary"),
            vmem_limit_bytes=_clamp_vmem(need1)),
    )(windows, *conv_params)

    x2 = xb if Tpad == T else jnp.pad(xb, ((0, 0), (0, Tpad - T), (0, 0)))

    kernel2 = functools.partial(_pass2_kernel, t_total=T)
    se_bytes = sum(int(p.size) * p.dtype.itemsize for p in se_params)
    need2 = (6 * tT * C * 2 + 2 * tT * C * jnp.dtype(out_dtype).itemsize
             + 2 * se_bytes + 6 * tT * C * 4 + (4 << 20))

    out = pl.pallas_call(
        kernel2,
        out_shape=jax.ShapeDtypeStruct((B, Tpad, C), out_dtype),
        grid_spec=pltpu.PrefetchScalarGridSpec(
            num_scalar_prefetch=0,
            grid=(B, nT),
            in_specs=[pl.BlockSpec((1, tT, C), lambda b, t: (b, t, 0)),
                      pl.BlockSpec((1, tT, C), lambda b, t: (b, t, 0)),
                      pl.BlockSpec((1, 1, C), lambda b, t: (b, 0, 0))]
                     + [full_spec(p) for p in se_params],
            out_specs=pl.BlockSpec((1, tT, C), lambda b, t: (b, t, 0))),
        compiler_params=pltpu.CompilerParams(
            dimension_semantics=("parallel", "parallel"),
            vmem_limit_bytes=_clamp_vmem(need2)),
    )(x2, h3, sums, *se_params)

    return out if Tpad == T else out[:, :T]


def se_res2block_bct(x_bct, raw, **kw):
    """PyTorch-layout (B, C, T) convenience wrapper. The two transposes are layout
    plumbing only -- prefer se_res2block_btc in a time-major model to avoid them."""
    out_btc = se_res2block_btc(jnp.transpose(x_bct, (0, 2, 1)), raw, **kw)
    return jnp.transpose(out_btc, (0, 2, 1))


# ---------------------------------------------------------------------------
# Pure-JAX reference (mirrors the PyTorch forward, eval-mode BN), for checking.
# ---------------------------------------------------------------------------
def reference_bct(x, raw, *, scale, kernel_size, dilation, padding, eps=1e-5):
    nums = scale if scale == 1 else scale - 1

    def bn(y, g, b, m, v):
        return (y - m[None, :, None]) / jnp.sqrt(v[None, :, None] + eps) * g[None, :, None] \
            + b[None, :, None]

    def conv1x1(y, w, b):
        return jnp.einsum("bct,oc->bot", y, w[:, :, 0]) + b[None, :, None]

    h = bn(jax.nn.relu(conv1x1(x, raw["c1_w"], raw["c1_b"])), *raw["bn1"])

    spx = jnp.split(h, scale, axis=1)
    out = []
    sp = spx[0]
    for i in range(nums):
        if i >= 1:
            sp = sp + spx[i]
        sp = jax.lax.conv_general_dilated(
            sp, raw["r_w"][i], window_strides=(1,), padding=[(padding, padding)],
            rhs_dilation=(dilation,), dimension_numbers=("NCH", "OIH", "NCH"))
        sp = sp + raw["r_b"][i][None, :, None]
        sp = bn(jax.nn.relu(sp), *raw["r_bn"][i])
        out.append(sp)
    if scale != 1:
        out.append(spx[nums])
    h2 = jnp.concatenate(out, axis=1)

    h3 = bn(jax.nn.relu(conv1x1(h2, raw["c3_w"], raw["c3_b"])), *raw["bn3"])

    m = h3.mean(axis=2)
    a = jax.nn.relu(m @ raw["se1_w"].T + raw["se1_b"])
    gate = jax.nn.sigmoid(a @ raw["se2_w"].T + raw["se2_b"])
    h4 = h3 * gate[:, :, None]
    return x + h4


# ---------------------------------------------------------------------------
if __name__ == "__main__":
    # Small demo config; T=56 with t_tile=32 exercises multi-tile, halo recompute,
    # the ragged (masked) tail and the cross-tile SE-sum accumulation.
    B, C, T = 2, 128, 56
    scale, K, DIL, PAD = 4, 3, 2, 2
    width = C // scale
    nums = scale - 1
    se_dim = 128

    keys = iter(jax.random.split(jax.random.PRNGKey(0), 64))

    def rnd(shape, s=0.1):
        return (s * jax.random.normal(next(keys), shape)).astype(jnp.float32)

    def pos(shape):
        return (0.5 + jax.random.uniform(next(keys), shape)).astype(jnp.float32)

    raw = dict(
        c1_w=rnd((C, C, 1)), c1_b=rnd((C,)),
        bn1=(pos((C,)), rnd((C,)), rnd((C,)), pos((C,))),      # gamma, beta, mean, var
        r_w=[rnd((width, width, K)) for _ in range(nums)],
        r_b=[rnd((width,)) for _ in range(nums)],
        r_bn=[(pos((width,)), rnd((width,)), rnd((width,)), pos((width,)))
              for _ in range(nums)],
        c3_w=rnd((C, C, 1)), c3_b=rnd((C,)),
        bn3=(pos((C,)), rnd((C,)), rnd((C,)), pos((C,))),
        se1_w=rnd((se_dim, C)), se1_b=rnd((se_dim,)),
        se2_w=rnd((C, se_dim)), se2_b=rnd((C,)),
    )

    x = jax.random.normal(next(keys), (B, C, T), dtype=jnp.float32)

    out = se_res2block_bct(x, raw, scale=scale, kernel_size=K, dilation=DIL,
                           padding=PAD, t_tile=32)
    out = jax.block_until_ready(out)

    ref = reference_bct(x, raw, scale=scale, kernel_size=K, dilation=DIL, padding=PAD)
    max_err = float(jnp.max(jnp.abs(out - ref)))
    # bf16 activations across HBM + bf16 matmul inputs with f32 accumulation
    # -> loose tolerance vs the f32 reference.
    assert jnp.allclose(out, ref, atol=5e-2, rtol=5e-2), f"max abs err = {max_err}"

    print("KERNEL_OK")
</pallas_src>

<mosaic_0001>
module attributes {stable_mosaic.version = 11 : i64} {
  func.func @_pass1_kernel(%arg0: i32, %arg1: i32, %arg2: memref<1x1x44x128xbf16, #tpu.memory_space<vmem>>, %arg3: memref<128x128xbf16, #tpu.memory_space<vmem>>, %arg4: memref<1x128xf32, #tpu.memory_space<vmem>>, %arg5: memref<1x128xf32, #tpu.memory_space<vmem>>, %arg6: memref<1x128xf32, #tpu.memory_space<vmem>>, %arg7: memref<3x96x32xbf16, #tpu.memory_space<vmem>>, %arg8: memref<3x1x32xf32, #tpu.memory_space<vmem>>, %arg9: memref<3x1x32xf32, #tpu.memory_space<vmem>>, %arg10: memref<3x1x32xf32, #tpu.memory_space<vmem>>, %arg11: memref<128x128xbf16, #tpu.memory_space<vmem>>, %arg12: memref<1x128xf32, #tpu.memory_space<vmem>>, %arg13: memref<1x128xf32, #tpu.memory_space<vmem>>, %arg14: memref<1x128xf32, #tpu.memory_space<vmem>>, %arg15: memref<1x32x128xbf16, #tpu.memory_space<vmem>>, %arg16: memref<1x1x128xf32, #tpu.memory_space<vmem>>, %arg17: memref<48x32xbf16, #tpu.memory_space<vmem>>, %arg18: memref<32x128xbf16, #tpu.memory_space<vmem>>) attributes {dimension_semantics = [#tpu.dimension_semantics<parallel>, #tpu.dimension_semantics<arbitrary>], iteration_bounds = array<i64: 2, 2>, scalar_prefetch = 0 : i64, scratch_operands = 2 : i64, tpu.core_type = #tpu.core_type<tc>, window_params = [{transform_indices = @transform_0, window_bounds = array<i64: 1, 1, 44, 128>}, {pipeline_mode = #tpu.pipeline_mode<synchronous>, transform_indices = @transform_1, window_bounds = array<i64: 128, 128>}, {pipeline_mode = #tpu.pipeline_mode<synchronous>, transform_indices = @transform_2, window_bounds = array<i64: 1, 128>}, {pipeline_mode = #tpu.pipeline_mode<synchronous>, transform_indices = @transform_3, window_bounds = array<i64: 1, 128>}, {pipeline_mode = #tpu.pipeline_mode<synchronous>, transform_indices = @transform_4, window_bounds = array<i64: 1, 128>}, {pipeline_mode = #tpu.pipeline_mode<synchronous>, transform_indices = @transform_5, window_bounds = array<i64: 3, 96, 32>}, {pipeline_mode = #tpu.pipeline_mode<synchronous>, transform_indices = @transform_6, window_bounds = array<i64: 3, 1, 32>}, {pipeline_mode = #tpu.pipeline_mode<synchronous>, transform_indices = @transform_7, window_bounds = array<i64: 3, 1, 32>}, {pipeline_mode = #tpu.pipeline_mode<synchronous>, transform_indices = @transform_8, window_bounds = array<i64: 3, 1, 32>}, {pipeline_mode = #tpu.pipeline_mode<synchronous>, transform_indices = @transform_9, window_bounds = array<i64: 128, 128>}, {pipeline_mode = #tpu.pipeline_mode<synchronous>, transform_indices = @transform_10, window_bounds = array<i64: 1, 128>}, {pipeline_mode = #tpu.pipeline_mode<synchronous>, transform_indices = @transform_11, window_bounds = array<i64: 1, 128>}, {pipeline_mode = #tpu.pipeline_mode<synchronous>, transform_indices = @transform_12, window_bounds = array<i64: 1, 128>}, {transform_indices = @transform_13, window_bounds = array<i64: 1, 32, 128>}, {transform_indices = @transform_14, window_bounds = array<i64: 1, 1, 128>}]} {
    %c32_i32 = arith.constant 32 : i32
    %0 = arith.muli %arg1, %c32_i32 : i32
    %c6_i32 = arith.constant 6 : i32
    %1 = arith.subi %0, %c6_i32 : i32
    %2 = tpu.iota {dimensions = array<i32: 0>} : vector<44x1xi32>
    %3 = vector.broadcast %1 : i32 to vector<44x1xi32>
    %4 = arith.addi %2, %3 : vector<44x1xi32>
    %c0_i32 = arith.constant 0 : i32
    %5 = vector.broadcast %c0_i32 : i32 to vector<44x1xi32>
    %6 = arith.cmpi sge, %4, %5 : vector<44x1xi32>
    %c56_i32 = arith.constant 56 : i32
    %7 = vector.broadcast %c56_i32 : i32 to vector<44x1xi32>
    %8 = arith.cmpi slt, %4, %7 : vector<44x1xi32>
    %9 = arith.andi %6, %8 : vector<44x1xi1>
    %10 = arith.extui %9 : vector<44x1xi1> to vector<44x1xi32>
    %11 = arith.sitofp %10 : vector<44x1xi32> to vector<44x1xf32>
    %c0 = arith.constant 0 : index
    %c0_0 = arith.constant 0 : index
    %c0_1 = arith.constant 0 : index
    %c0_2 = arith.constant 0 : index
    %12 = vector.load %arg2[%c0, %c0_0, %c0_1, %c0_2] : memref<1x1x44x128xbf16, #tpu.memory_space<vmem>>, vector<1x1x44x128xbf16>
    %13 = vector.shape_cast %12 : vector<1x1x44x128xbf16> to vector<44x128xbf16>
    %c0_3 = arith.constant 0 : index
    %c0_4 = arith.constant 0 : index
    %14 = vector.load %arg3[%c0_3, %c0_4] : memref<128x128xbf16, #tpu.memory_space<vmem>>, vector<128x128xbf16>
    %cst = arith.constant dense<0.000000e+00> : vector<44x128xf32>
    %15 = tpu.matmul %13, %14, %cst {dimension_numbers = #tpu.dot_dimension_numbers<[1], [0], [0], [1], [0, 0, 1, 1], [], []>} : vector<44x128xbf16>, vector<128x128xbf16>, vector<44x128xf32> -> vector<44x128xf32>
    %c0_5 = arith.constant 0 : index
    %c0_6 = arith.constant 0 : index
    %16 = vector.load %arg4[%c0_5, %c0_6] : memref<1x128xf32, #tpu.memory_space<vmem>>, vector<1x128xf32>
    %17 = vector.broadcast %16 : vector<1x128xf32> to vector<44x128xf32>
    %18 = arith.addf %15, %17 : vector<44x128xf32>
    %cst_7 = arith.constant 0.000000e+00 : f32
    %19 = vector.broadcast %cst_7 : f32 to vector<44x128xf32>
    %20 = arith.maximumf %18, %19 : vector<44x128xf32>
    %c0_8 = arith.constant 0 : index
    %c0_9 = arith.constant 0 : index
    %21 = vector.load %arg5[%c0_8, %c0_9] : memref<1x128xf32, #tpu.memory_space<vmem>>, vector<1x128xf32>
    %22 = vector.broadcast %21 : vector<1x128xf32> to vector<44x128xf32>
    %23 = arith.mulf %20, %22 : vector<44x128xf32>
    %c0_10 = arith.constant 0 : index
    %c0_11 = arith.constant 0 : index
    %24 = vector.load %arg6[%c0_10, %c0_11] : memref<1x128xf32, #tpu.memory_space<vmem>>, vector<1x128xf32>
    %25 = vector.broadcast %24 : vector<1x128xf32> to vector<44x128xf32>
    %26 = arith.addf %23, %25 : vector<44x128xf32>
    %27 = vector.broadcast %11 : vector<44x1xf32> to vector<44x128xf32>
    %28 = arith.mulf %26, %27 : vector<44x128xf32>
    %cst_12 = arith.constant 0.000000e+00 : bf16
    %29 = vector.broadcast %cst_12 : bf16 to vector<2x32xbf16>
    %c0_13 = arith.constant 0 : index
    %c0_14 = arith.constant 0 : index
    %30 = vector.load %arg17[%c0_13, %c0_14] : memref<48x32xbf16, #tpu.memory_space<vmem>>, vector<2x32xbf16>
    tpu.vector_store %arg17[%c0_13, %c0_14], %29 {strides = array<i32>} : memref<48x32xbf16, #tpu.memory_space<vmem>>, vector<2x32xbf16>,
    %c46 = arith.constant 46 : index
    %c0_15 = arith.constant 0 : index
    %31 = vector.load %arg17[%c46, %c0_15] : memref<48x32xbf16, #tpu.memory_space<vmem>>, vector<2x32xbf16>
    tpu.vector_store %arg17[%c46, %c0_15], %29 {strides = array<i32>} : memref<48x32xbf16, #tpu.memory_space<vmem>>, vector<2x32xbf16>,
    %32 = vector.extract_strided_slice %28 {offsets = [0, 0], sizes = [44, 32], strides = [1, 1]} : vector<44x128xf32> to vector<44x32xf32>
    %33 = arith.truncf %32 : vector<44x32xf32> to vector<44x32xbf16>
    %c2 = arith.constant 2 : index
    %c0_16 = arith.constant 0 : index
    %34 = vector.load %arg17[%c2, %c0_16] : memref<48x32xbf16, #tpu.memory_space<vmem>>, vector<44x32xbf16>
    tpu.vector_store %arg17[%c2, %c0_16], %33 {strides = array<i32>} : memref<48x32xbf16, #tpu.memory_space<vmem>>, vector<44x32xbf16>,
    %c0_17 = arith.constant 0 : index
    %c0_18 = arith.constant 0 : index
    %35 = vector.load %arg17[%c0_17, %c0_18] : memref<48x32xbf16, #tpu.memory_space<vmem>>, vector<44x32xbf16>
    %c2_19 = arith.constant 2 : index
    %c0_20 = arith.constant 0 : index
    %36 = vector.load %arg17[%c2_19, %c0_20] : memref<48x32xbf16, #tpu.memory_space<vmem>>, vector<44x32xbf16>
    %c4 = arith.constant 4 : index
    %c0_21 = arith.constant 0 : index
    %37 = vector.load %arg17[%c4, %c0_21] : memref<48x32xbf16, #tpu.memory_space<vmem>>, vector<44x32xbf16>
    %38 = tpu.concatenate %35, %36, %37 in 1 : vector<44x32xbf16>, vector<44x32xbf16>, vector<44x32xbf16> -> vector<44x96xbf16>
    %c0_22 = arith.constant 0 : index
    %c0_23 = arith.constant 0 : index
    %c0_24 = arith.constant 0 : index
    %39 = vector.load %arg7[%c0_22, %c0_23, %c0_24] : memref<3x96x32xbf16, #tpu.memory_space<vmem>>, vector<1x96x32xbf16>
    %40 = vector.shape_cast %39 : vector<1x96x32xbf16> to vector<96x32xbf16>
    %cst_25 = arith.constant dense<0.000000e+00> : vector<44x32xf32>
    %41 = tpu.matmul %38, %40, %cst_25 {dimension_numbers = #tpu.dot_dimension_numbers<[1], [0], [0], [1], [0, 0, 1, 1], [], []>} : vector<44x96xbf16>, vector<96x32xbf16>, vector<44x32xf32> -> vector<44x32xf32>
    %c0_26 = arith.constant 0 : index
    %c0_27 = arith.constant 0 : index
    %c0_28 = arith.constant 0 : index
    %42 = vector.load %arg8[%c0_26, %c0_27, %c0_28] : memref<3x1x32xf32, #tpu.memory_space<vmem>>, vector<1x1x32xf32>
    %43 = vector.shape_cast %42 : vector<1x1x32xf32> to vector<1x32xf32>
    %44 = vector.broadcast %43 : vector<1x32xf32> to vector<44x32xf32>
    %45 = arith.addf %41, %44 : vector<44x32xf32>
    %cst_29 = arith.constant 0.000000e+00 : f32
    %46 = vector.broadcast %cst_29 : f32 to vector<44x32xf32>
    %47 = arith.maximumf %45, %46 : vector<44x32xf32>
    %c0_30 = arith.constant 0 : index
    %c0_31 = arith.constant 0 : index
    %c0_32 = arith.constant 0 : index
    %48 = vector.load %arg9[%c0_30, %c0_31, %c0_32] : memref<3x1x32xf32, #tpu.memory_space<vmem>>, vector<1x1x32xf32>
    %49 = vector.shape_cast %48 : vector<1x1x32xf32> to vector<1x32xf32>
    %50 = vector.broadcast %49 : vector<1x32xf32> to vector<44x32xf32>
    %51 = arith.mulf %47, %50 : vector<44x32xf32>
    %c0_33 = arith.constant 0 : index
    %c0_34 = arith.constant 0 : index
    %c0_35 = arith.constant 0 : index
    %52 = vector.load %arg10[%c0_33, %c0_34, %c0_35] : memref<3x1x32xf32, #tpu.memory_space<vmem>>, vector<1x1x32xf32>
    %53 = vector.shape_cast %52 : vector<1x1x32xf32> to vector<1x32xf32>
    %54 = vector.broadcast %53 : vector<1x32xf32> to vector<44x32xf32>
    %55 = arith.addf %51, %54 : vector<44x32xf32>
    %56 = vector.broadcast %11 : vector<44x1xf32> to vector<44x32xf32>
    %57 = arith.mulf %55, %56 : vector<44x32xf32>
    %58 = vector.extract_strided_slice %57 {offsets = [6, 0], sizes = [32, 32], strides = [1, 1]} : vector<44x32xf32> to vector<32x32xf32>
    %59 = arith.truncf %58 : vector<32x32xf32> to vector<32x32xbf16>
    %c0_36 = arith.constant 0 : index
    %c0_37 = arith.constant 0 : index
    %60 = vector.load %arg18[%c0_36, %c0_37] : memref<32x128xbf16, #tpu.memory_space<vmem>>, vector<32x32xbf16>
    tpu.vector_store %arg18[%c0_36, %c0_37], %59 {strides = array<i32>} : memref<32x128xbf16, #tpu.memory_space<vmem>>, vector<32x32xbf16>,
    %61 = vector.extract_strided_slice %28 {offsets = [0, 32], sizes = [44, 32], strides = [1, 1]} : vector<44x128xf32> to vector<44x32xf32>
    %62 = arith.addf %57, %61 : vector<44x32xf32>
    %63 = arith.truncf %62 : vector<44x32xf32> to vector<44x32xbf16>
    %c2_38 = arith.constant 2 : index
    %c0_39 = arith.constant 0 : index
    %64 = vector.load %arg17[%c2_38, %c0_39] : memref<48x32xbf16, #tpu.memory_space<vmem>>, vector<44x32xbf16>
    tpu.vector_store %arg17[%c2_38, %c0_39], %63 {strides = array<i32>} : memref<48x32xbf16, #tpu.memory_space<vmem>>, vector<44x32xbf16>,
    %c0_40 = arith.constant 0 : index
    %c0_41 = arith.constant 0 : index
    %65 = vector.load %arg17[%c0_40, %c0_41] : memref<48x32xbf16, #tpu.memory_space<vmem>>, vector<44x32xbf16>
    %c2_42 = arith.constant 2 : index
    %c0_43 = arith.constant 0 : index
    %66 = vector.load %arg17[%c2_42, %c0_43] : memref<48x32xbf16, #tpu.memory_space<vmem>>, vector<44x32xbf16>
    %c4_44 = arith.constant 4 : index
    %c0_45 = arith.constant 0 : index
    %67 = vector.load %arg17[%c4_44, %c0_45] : memref<48x32xbf16, #tpu.memory_space<vmem>>, vector<44x32xbf16>
    %68 = tpu.concatenate %65, %66, %67 in 1 : vector<44x32xbf16>, vector<44x32xbf16>, vector<44x32xbf16> -> vector<44x96xbf16>
    %c1 = arith.constant 1 : index
    %c0_46 = arith.constant 0 : index
    %c0_47 = arith.constant 0 : index
    %69 = vector.load %arg7[%c1, %c0_46, %c0_47] : memref<3x96x32xbf16, #tpu.memory_space<vmem>>, vector<1x96x32xbf16>
    %70 = vector.shape_cast %69 : vector<1x96x32xbf16> to vector<96x32xbf16>
    %cst_48 = arith.constant dense<0.000000e+00> : vector<44x32xf32>
    %71 = tpu.matmul %68, %70, %cst_48 {dimension_numbers = #tpu.dot_dimension_numbers<[1], [0], [0], [1], [0, 0, 1, 1], [], []>} : vector<44x96xbf16>, vector<96x32xbf16>, vector<44x32xf32> -> vector<44x32xf32>
    %c1_49 = arith.constant 1 : index
    %c0_50 = arith.constant 0 : index
    %c0_51 = arith.constant 0 : index
    %72 = vector.load %arg8[%c1_49, %c0_50, %c0_51] : memref<3x1x32xf32, #tpu.memory_space<vmem>>, vector<1x1x32xf32>
    %73 = vector.shape_cast %72 : vector<1x1x32xf32> to vector<1x32xf32>
    %74 = vector.broadcast %73 : vector<1x32xf32> to vector<44x32xf32>
    %75 = arith.addf %71, %74 : vector<44x32xf32>
    %cst_52 = arith.constant 0.000000e+00 : f32
    %76 = vector.broadcast %cst_52 : f32 to vector<44x32xf32>
    %77 = arith.maximumf %75, %76 : vector<44x32xf32>
    %c1_53 = arith.constant 1 : index
    %c0_54 = arith.constant 0 : index
    %c0_55 = arith.constant 0 : index
    %78 = vector.load %arg9[%c1_53, %c0_54, %c0_55] : memref<3x1x32xf32, #tpu.memory_space<vmem>>, vector<1x1x32xf32>
    %79 = vector.shape_cast %78 : vector<1x1x32xf32> to vector<1x32xf32>
    %80 = vector.broadcast %79 : vector<1x32xf32> to vector<44x32xf32>
    %81 = arith.mulf %77, %80 : vector<44x32xf32>
    %c1_56 = arith.constant 1 : index
    %c0_57 = arith.constant 0 : index
    %c0_58 = arith.constant 0 : index
    %82 = vector.load %arg10[%c1_56, %c0_57, %c0_58] : memref<3x1x32xf32, #tpu.memory_space<vmem>>, vector<1x1x32xf32>
    %83 = vector.shape_cast %82 : vector<1x1x32xf32> to vector<1x32xf32>
    %84 = vector.broadcast %83 : vector<1x32xf32> to vector<44x32xf32>
    %85 = arith.addf %81, %84 : vector<44x32xf32>
    %86 = vector.broadcast %11 : vector<44x1xf32> to vector<44x32xf32>
    %87 = arith.mulf %85, %86 : vector<44x32xf32>
    %88 = vector.extract_strided_slice %87 {offsets = [6, 0], sizes = [32, 32], strides = [1, 1]} : vector<44x32xf32> to vector<32x32xf32>
    %89 = arith.truncf %88 : vector<32x32xf32> to vector<32x32xbf16>
    %c0_59 = arith.constant 0 : index
    %c32 = arith.constant 32 : index
    %90 = vector.load %arg18[%c0_59, %c32] : memref<32x128xbf16, #tpu.memory_space<vmem>>, vector<32x32xbf16>
    tpu.vector_store %arg18[%c0_59, %c32], %89 {strides = array<i32>} : memref<32x128xbf16, #tpu.memory_space<vmem>>, vector<32x32xbf16>,
    %91 = vector.extract_strided_slice %28 {offsets = [0, 64], sizes = [44, 32], strides = [1, 1]} : vector<44x128xf32> to vector<44x32xf32>
    %92 = arith.addf %87, %91 : vector<44x32xf32>
    %93 = arith.truncf %92 : vector<44x32xf32> to vector<44x32xbf16>
    %c2_60 = arith.constant 2 : index
    %c0_61 = arith.constant 0 : index
    %94 = vector.load %arg17[%c2_60, %c0_61] : memref<48x32xbf16, #tpu.memory_space<vmem>>, vector<44x32xbf16>
    tpu.vector_store %arg17[%c2_60, %c0_61], %93 {strides = array<i32>} : memref<48x32xbf16, #tpu.memory_space<vmem>>, vector<44x32xbf16>,
    %c0_62 = arith.constant 0 : index
    %c0_63 = arith.constant 0 : index
    %95 = vector.load %arg17[%c0_62, %c0_63] : memref<48x32xbf16, #tpu.memory_space<vmem>>, vector<44x32xbf16>
    %c2_64 = arith.constant 2 : index
    %c0_65 = arith.constant 0 : index
    %96 = vector.load %arg17[%c2_64, %c0_65] : memref<48x32xbf16, #tpu.memory_space<vmem>>, vector<44x32xbf16>
    %c4_66 = arith.constant 4 : index
    %c0_67 = arith.constant 0 : index
    %97 = vector.load %arg17[%c4_66, %c0_67] : memref<48x32xbf16, #tpu.memory_space<vmem>>, vector<44x32xbf16>
    %98 = tpu.concatenate %95, %96, %97 in 1 : vector<44x32xbf16>, vector<44x32xbf16>, vector<44x32xbf16> -> vector<44x96xbf16>
    %c2_68 = arith.constant 2 : index
    %c0_69 = arith.constant 0 : index
    %c0_70 = arith.constant 0 : index
    %99 = vector.load %arg7[%c2_68, %c0_69, %c0_70] : memref<3x96x32xbf16, #tpu.memory_space<vmem>>, vector<1x96x32xbf16>
    %100 = vector.shape_cast %99 : vector<1x96x32xbf16> to vector<96x32xbf16>
    %cst_71 = arith.constant dense<0.000000e+00> : vector<44x32xf32>
    %101 = tpu.matmul %98, %100, %cst_71 {dimension_numbers = #tpu.dot_dimension_numbers<[1], [0], [0], [1], [0, 0, 1, 1], [], []>} : vector<44x96xbf16>, vector<96x32xbf16>, vector<44x32xf32> -> vector<44x32xf32>
    %c2_72 = arith.constant 2 : index
    %c0_73 = arith.constant 0 : index
    %c0_74 = arith.constant 0 : index
    %102 = vector.load %arg8[%c2_72, %c0_73, %c0_74] : memref<3x1x32xf32, #tpu.memory_space<vmem>>, vector<1x1x32xf32>
    %103 = vector.shape_cast %102 : vector<1x1x32xf32> to vector<1x32xf32>
    %104 = vector.broadcast %103 : vector<1x32xf32> to vector<44x32xf32>
    %105 = arith.addf %101, %104 : vector<44x32xf32>
    %cst_75 = arith.constant 0.000000e+00 : f32
    %106 = vector.broadcast %cst_75 : f32 to vector<44x32xf32>
    %107 = arith.maximumf %105, %106 : vector<44x32xf32>
    %c2_76 = arith.constant 2 : index
    %c0_77 = arith.constant 0 : index
    %c0_78 = arith.constant 0 : index
    %108 = vector.load %arg9[%c2_76, %c0_77, %c0_78] : memref<3x1x32xf32, #tpu.memory_space<vmem>>, vector<1x1x32xf32>
    %109 = vector.shape_cast %108 : vector<1x1x32xf32> to vector<1x32xf32>
    %110 = vector.broadcast %109 : vector<1x32xf32> to vector<44x32xf32>
    %111 = arith.mulf %107, %110 : vector<44x32xf32>
    %c2_79 = arith.constant 2 : index
    %c0_80 = arith.constant 0 : index
    %c0_81 = arith.constant 0 : index
    %112 = vector.load %arg10[%c2_79, %c0_80, %c0_81] : memref<3x1x32xf32, #tpu.memory_space<vmem>>, vector<1x1x32xf32>
    %113 = vector.shape_cast %112 : vector<1x1x32xf32> to vector<1x32xf32>
    %114 = vector.broadcast %113 : vector<1x32xf32> to vector<44x32xf32>
    %115 = arith.addf %111, %114 : vector<44x32xf32>
    %116 = vector.broadcast %11 : vector<44x1xf32> to vector<44x32xf32>
    %117 = arith.mulf %115, %116 : vector<44x32xf32>
    %118 = vector.extract_strided_slice %117 {offsets = [6, 0], sizes = [32, 32], strides = [1, 1]} : vector<44x32xf32> to vector<32x32xf32>
    %119 = arith.truncf %118 : vector<32x32xf32> to vector<32x32xbf16>
    %c0_82 = arith.constant 0 : index
    %c64 = arith.constant 64 : index
    %120 = vector.load %arg18[%c0_82, %c64] : memref<32x128xbf16, #tpu.memory_space<vmem>>, vector<32x32xbf16>
    tpu.vector_store %arg18[%c0_82, %c64], %119 {strides = array<i32>} : memref<32x128xbf16, #tpu.memory_space<vmem>>, vector<32x32xbf16>,
    %121 = vector.extract_strided_slice %28 {offsets = [6, 96], sizes = [32, 32], strides = [1, 1]} : vector<44x128xf32> to vector<32x32xf32>
    %122 = arith.truncf %121 : vector<32x32xf32> to vector<32x32xbf16>
    %c0_83 = arith.constant 0 : index
    %c96 = arith.constant 96 : index
    %123 = vector.load %arg18[%c0_83, %c96] : memref<32x128xbf16, #tpu.memory_space<vmem>>, vector<32x32xbf16>
    tpu.vector_store %arg18[%c0_83, %c96], %122 {strides = array<i32>} : memref<32x128xbf16, #tpu.memory_space<vmem>>, vector<32x32xbf16>,
    %c0_84 = arith.constant 0 : index
    %c0_85 = arith.constant 0 : index
    %124 = vector.load %arg18[%c0_84, %c0_85] : memref<32x128xbf16, #tpu.memory_space<vmem>>, vector<32x128xbf16>
    %c0_86 = arith.constant 0 : index
    %c0_87 = arith.constant 0 : index
    %125 = vector.load %arg11[%c0_86, %c0_87] : memref<128x128xbf16, #tpu.memory_space<vmem>>, vector<128x128xbf16>
    %cst_88 = arith.constant dense<0.000000e+00> : vector<32x128xf32>
    %126 = tpu.matmul %124, %125, %cst_88 {dimension_numbers = #tpu.dot_dimension_numbers<[1], [0], [0], [1], [0, 0, 1, 1], [], []>} : vector<32x128xbf16>, vector<128x128xbf16>, vector<32x128xf32> -> vector<32x128xf32>
    %c0_89 = arith.constant 0 : index
    %c0_90 = arith.constant 0 : index
    %127 = vector.load %arg12[%c0_89, %c0_90] : memref<1x128xf32, #tpu.memory_space<vmem>>, vector<1x128xf32>
    %128 = vector.broadcast %127 : vector<1x128xf32> to vector<32x128xf32>
    %129 = arith.addf %126, %128 : vector<32x128xf32>
    %cst_91 = arith.constant 0.000000e+00 : f32
    %130 = vector.broadcast %cst_91 : f32 to vector<32x128xf32>
    %131 = arith.maximumf %129, %130 : vector<32x128xf32>
    %c0_92 = arith.constant 0 : index
    %c0_93 = arith.constant 0 : index
    %132 = vector.load %arg13[%c0_92, %c0_93] : memref<1x128xf32, #tpu.memory_space<vmem>>, vector<1x128xf32>
    %133 = vector.broadcast %132 : vector<1x128xf32> to vector<32x128xf32>
    %134 = arith.mulf %131, %133 : vector<32x128xf32>
    %c0_94 = arith.constant 0 : index
    %c0_95 = arith.constant 0 : index
    %135 = vector.load %arg14[%c0_94, %c0_95] : memref<1x128xf32, #tpu.memory_space<vmem>>, vector<1x128xf32>
    %136 = vector.broadcast %135 : vector<1x128xf32> to vector<32x128xf32>
    %137 = arith.addf %134, %136 : vector<32x128xf32>
    %138 = vector.extract_strided_slice %11 {offsets = [6, 0], sizes = [32, 1], strides = [1, 1]} : vector<44x1xf32> to vector<32x1xf32>
    %139 = vector.broadcast %138 : vector<32x1xf32> to vector<32x128xf32>
    %140 = arith.mulf %137, %139 : vector<32x128xf32>
    %141 = arith.truncf %140 : vector<32x128xf32> to vector<32x128xbf16>
    %c0_96 = arith.constant 0 : index
    %c0_97 = arith.constant 0 : index
    %c0_98 = arith.constant 0 : index
    %142 = vector.load %arg15[%c0_96, %c0_97, %c0_98] : memref<1x32x128xbf16, #tpu.memory_space<vmem>>, vector<1x32x128xbf16>
    %143 = vector.shape_cast %142 : vector<1x32x128xbf16> to vector<32x128xbf16>
    %144 = vector.shape_cast %141 : vector<32x128xbf16> to vector<1x32x128xbf16>
    tpu.vector_store %arg15[%c0_96, %c0_97, %c0_98], %144 {strides = array<i32>} : memref<1x32x128xbf16, #tpu.memory_space<vmem>>, vector<1x32x128xbf16>,
    %cst_99 = arith.constant 1.000000e+00 : bf16
    %145 = vector.broadcast %cst_99 : bf16 to vector<1x32xbf16>
    %cst_100 = arith.constant dense<0.000000e+00> : vector<1x128xf32>
    %146 = tpu.matmul %145, %141, %cst_100 {dimension_numbers = #tpu.dot_dimension_numbers<[1], [0], [0], [1], [0, 0, 1, 1], [], []>} : vector<1x32xbf16>, vector<32x128xbf16>, vector<1x128xf32> -> vector<1x128xf32>
    %c0_i32_101 = arith.constant 0 : i32
    %147 = arith.cmpi eq, %arg1, %c0_i32_101 : i32
    %148 = arith.extui %147 : i1 to i32
    %c0_i32_102 = arith.constant 0 : i32
    %149 = arith.cmpi ne, %148, %c0_i32_102 : i32
    scf.if %149 {
      %cst_109 = arith.constant 0.000000e+00 : f32
      %156 = vector.broadcast %cst_109 : f32 to vector<1x1x128xf32>
      %c0_110 = arith.constant 0 : index
      %c0_111 = arith.constant 0 : index
      %c0_112 = arith.constant 0 : index
      %157 = vector.load %arg16[%c0_110, %c0_111, %c0_112] : memref<1x1x128xf32, #tpu.memory_space<vmem>>, vector<1x1x128xf32>
      tpu.vector_store %arg16[%c0_110, %c0_111, %c0_112], %156 {strides = array<i32>} : memref<1x1x128xf32, #tpu.memory_space<vmem>>, vector<1x1x128xf32>,
    } else {
    }
    %c0_103 = arith.constant 0 : index
    %c0_104 = arith.constant 0 : index
    %c0_105 = arith.constant 0 : index
    %150 = vector.load %arg16[%c0_103, %c0_104, %c0_105] : memref<1x1x128xf32, #tpu.memory_space<vmem>>, vector<1x1x128xf32>
    %151 = vector.shape_cast %150 : vector<1x1x128xf32> to vector<1x128xf32>
    %152 = arith.addf %151, %146 : vector<1x128xf32>
    %c0_106 = arith.constant 0 : index
    %c0_107 = arith.constant 0 : index
    %c0_108 = arith.constant 0 : index
    %153 = vector.load %arg16[%c0_106, %c0_107, %c0_108] : memref<1x1x128xf32, #tpu.memory_space<vmem>>, vector<1x1x128xf32>
    %154 = vector.shape_cast %153 : vector<1x1x128xf32> to vector<1x128xf32>
    %155 = vector.shape_cast %152 : vector<1x128xf32> to vector<1x1x128xf32>
    tpu.vector_store %arg16[%c0_106, %c0_107, %c0_108], %155 {strides = array<i32>} : memref<1x1x128xf32, #tpu.memory_space<vmem>>, vector<1x1x128xf32>,
    return
  }
  func.func @transform_0(%arg0: i32, %arg1: i32) -> (i32, i32, i32, i32) {
    %c0_i32 = arith.constant 0 : i32
    %c0_i32_0 = arith.constant 0 : i32
    %c0_i32_1 = arith.constant 0 : i32
    return %arg0, %arg1, %c0_i32, %c0_i32_0 : i32, i32, i32, i32
  }
  func.func @transform_1(%arg0: i32, %arg1: i32) -> (i32, i32) {
    %c0_i32 = arith.constant 0 : i32
    %c0_i32_0 = arith.constant 0 : i32
    %c0_i32_1 = arith.constant 0 : i32
    return %c0_i32, %c0_i32_0 : i32, i32
  }
  func.func @transform_2(%arg0: i32, %arg1: i32) -> (i32, i32) {
    %c0_i32 = arith.constant 0 : i32
    %c0_i32_0 = arith.constant 0 : i32
    %c0_i32_1 = arith.constant 0 : i32
    return %c0_i32, %c0_i32_0 : i32, i32
  }
  func.func @transform_3(%arg0: i32, %arg1: i32) -> (i32, i32) {
    %c0_i32 = arith.constant 0 : i32
    %c0_i32_0 = arith.constant 0 : i32
    %c0_i32_1 = arith.constant 0 : i32
    return %c0_i32, %c0_i32_0 : i32, i32
  }
  func.func @transform_4(%arg0: i32, %arg1: i32) -> (i32, i32) {
    %c0_i32 = arith.constant 0 : i32
    %c0_i32_0 = arith.constant 0 : i32
    %c0_i32_1 = arith.constant 0 : i32
    return %c0_i32, %c0_i32_0 : i32, i32
  }
  func.func @transform_5(%arg0: i32, %arg1: i32) -> (i32, i32, i32) {
    %c0_i32 = arith.constant 0 : i32
    %c0_i32_0 = arith.constant 0 : i32
    %c0_i32_1 = arith.constant 0 : i32
    %c0_i32_2 = arith.constant 0 : i32
    return %c0_i32, %c0_i32_0, %c0_i32_1 : i32, i32, i32
  }
  func.func @transform_6(%arg0: i32, %arg1: i32) -> (i32, i32, i32) {
    %c0_i32 = arith.constant 0 : i32
    %c0_i32_0 = arith.constant 0 : i32
    %c0_i32_1 = arith.constant 0 : i32
    %c0_i32_2 = arith.constant 0 : i32
    return %c0_i32, %c0_i32_0, %c0_i32_1 : i32, i32, i32
  }
  func.func @transform_7(%arg0: i32, %arg1: i32) -> (i32, i32, i32) {
    %c0_i32 = arith.constant 0 : i32
    %c0_i32_0 = arith.constant 0 : i32
    %c0_i32_1 = arith.constant 0 : i32
    %c0_i32_2 = arith.constant 0 : i32
    return %c0_i32, %c0_i32_0, %c0_i32_1 : i32, i32, i32
  }
  func.func @transform_8(%arg0: i32, %arg1: i32) -> (i32, i32, i32) {
    %c0_i32 = arith.constant 0 : i32
    %c0_i32_0 = arith.constant 0 : i32
    %c0_i32_1 = arith.constant 0 : i32
    %c0_i32_2 = arith.constant 0 : i32
    return %c0_i32, %c0_i32_0, %c0_i32_1 : i32, i32, i32
  }
  func.func @transform_9(%arg0: i32, %arg1: i32) -> (i32, i32) {
    %c0_i32 = arith.constant 0 : i32
    %c0_i32_0 = arith.constant 0 : i32
    %c0_i32_1 = arith.constant 0 : i32
    return %c0_i32, %c0_i32_0 : i32, i32
  }
  func.func @transform_10(%arg0: i32, %arg1: i32) -> (i32, i32) {
    %c0_i32 = arith.constant 0 : i32
    %c0_i32_0 = arith.constant 0 : i32
    %c0_i32_1 = arith.constant 0 : i32
    return %c0_i32, %c0_i32_0 : i32, i32
  }
  func.func @transform_11(%arg0: i32, %arg1: i32) -> (i32, i32) {
    %c0_i32 = arith.constant 0 : i32
    %c0_i32_0 = arith.constant 0 : i32
    %c0_i32_1 = arith.constant 0 : i32
    return %c0_i32, %c0_i32_0 : i32, i32
  }
  func.func @transform_12(%arg0: i32, %arg1: i32) -> (i32, i32) {
    %c0_i32 = arith.constant 0 : i32
    %c0_i32_0 = arith.constant 0 : i32
    %c0_i32_1 = arith.constant 0 : i32
    return %c0_i32, %c0_i32_0 : i32, i32
  }
  func.func @transform_13(%arg0: i32, %arg1: i32) -> (i32, i32, i32) {
    %c0_i32 = arith.constant 0 : i32
    %c0_i32_0 = arith.constant 0 : i32
    return %arg0, %arg1, %c0_i32 : i32, i32, i32
  }
  func.func @transform_14(%arg0: i32, %arg1: i32) -> (i32, i32, i32) {
    %c0_i32 = arith.constant 0 : i32
    %c0_i32_0 = arith.constant 0 : i32
    %c0_i32_1 = arith.constant 0 : i32
    return %arg0, %c0_i32, %c0_i32_0 : i32, i32, i32
  }
}

</mosaic_0001>

<bundles_post_ra>
// kernel: tpu_custom_call.1
= control target key start
LH: loop header
LB: loop body
LE: loop exit
PB: predicated region body
PF: predicated region fallthrough
CT: control target
= control target key end

     0   :  { %s3286_s0 = inlined_call_operand.vmem [shape: bf16[2,2,44,128], index: 0, kind: input, shape index: {}]   ;;  %s3287_s1 = inlined_call_operand.vmem [shape: bf16[128,128], index: 1, kind: input, shape index: {}]   ;;  %s3288_s2 = inlined_call_operand.vmem [shape: f32[1,128], index: 2, kind: input, shape index: {}]   ;;  %s3289_s3 = inlined_call_operand.vmem [shape: f32[1,128], index: 3, kind: input, shape index: {}]   ;;  %s3290_s4 = inlined_call_operand.vmem [shape: f32[1,128], index: 4, kind: input, shape index: {}]   ;;  %s3291_s5 = inlined_call_operand.vmem [shape: bf16[3,96,32], index: 5, kind: input, shape index: {}]   ;;  %s3292_s6 = inlined_call_operand.vmem [shape: f32[3,1,32], index: 6, kind: input, shape index: {}]   ;;  %s3293_s7 = inlined_call_operand.vmem [shape: f32[3,1,32], index: 7, kind: input, shape index: {}]   ;;  %s3294_s8 = inlined_call_operand.vmem [shape: f32[3,1,32], index: 8, kind: input, shape index: {}]   ;;  %s3295_s9 = inlined_call_operand.vmem [shape: bf16[128,128], index: 9, kind: input, shape index: {}]   ;;  %s3296_s10 = inlined_call_operand.vmem [shape: f32[1,128], index: 10, kind: input, shape index: {}]   ;;  %s3297_s11 = inlined_call_operand.vmem [shape: f32[1,128], index: 11, kind: input, shape index: {}]   ;;  %s3298_s12 = inlined_call_operand.vmem [shape: f32[1,128], index: 12, kind: input, shape index: {}]   ;;  %s3299_s13 = inlined_call_operand.hbm [shape: bf16[2,64,128], index: 13, kind: output, shape index: {0}]   ;;  %s3300_s14 = inlined_call_operand.hbm [shape: f32[2,1,128], index: 14, kind: output, shape index: {1}]  }
   0x1   :  { %3316 = sst [smem:[#allocation21_spill]] %s3286_s0 }
   0x2   :  { %3317 = sst [smem:[#allocation22_spill]] %s3287_s1 }
   0x3   :  { %3318 = sst [smem:[#allocation23_spill]] %s3288_s2 }
   0x4   :  { %3319 = sst [smem:[#allocation24_spill]] %s3289_s3 }
   0x5   :  { %3320 = sst [smem:[#allocation25_spill]] %s3290_s4 }
   0x6   :  { %3321 = sst [smem:[#allocation26_spill]] %s3296_s10 }
   0x7   :  { %3322 = sst [smem:[#allocation27_spill]] %s3297_s11 }
   0x8   :  { %3323 = sst [smem:[#allocation28_spill]] %s3298_s12 }
   0x9   :  { %3324 = sst [smem:[#allocation29_spill]] %s3299_s13 }
   0xa   :  { %3325 = sst [smem:[#allocation30_spill]] %s3300_s14 }
   0xb   :  { %20 = vsyncpa [#allocation5], 0 }
   0xc   :  { %22 = vsyncpa [#allocation5 + $0x1], 0 }
   0xd   :  { %23 = vsyncpa [#allocation7], 0 }
   0xe   :  { %25 = vsyncpa [#allocation7 + $0x1], 0  ;;  %s2633_s29 = smov 0   ;;  %s2635_s30 = smov 0  }
   0xf   :  { %s2637_s15 = smov 0   ;;  %s2639_s16 = smov 0  }
  0x10   :  { %s2641_s17 = smov 0   ;;  %s2643_s18 = smov 0  }
  0x11   :  { %s2645_s19 = smov 0   ;;  %s2647_s20 = smov 0  }
  0x12   :  { %s2649_s21 = smov 0   ;;  %s2651_s22 = smov 0  }
  0x13   :  { %s2653_s23 = smov 0  }
  0x14 LB: > { %3326 = sst [smem:[#allocation10_spill]] %s2513_s15  ;;  %s1934_s24 = sadd.s32 4294967295, %s2545_s23   ;;  %s2545_s23 = sphi %s2653_s23, %s31_s23   ;;  %s2541_s22 = sphi %s2651_s22, %s3369_s22   ;;  %s2537_s21 = sphi %s2649_s21, %s3368_s21   ;;  %s2533_s20 = sphi %s2647_s20, %s3367_s20   ;;  %s2529_s19 = sphi %s2645_s19, %s3366_s19   ;;  %s2525_s18 = sphi %s2643_s18, %s3365_s18   ;;  %s2521_s17 = sphi %s2641_s17, %s3364_s17   ;;  %s2517_s16 = sphi %s2639_s16, %s3363_s16   ;;  %s2513_s15 = sphi %s2637_s15, %s3362_s15   ;;  %s2509_s30 = sphi %s2635_s30, %s3371_s30   ;;  %s2505_s29 = sphi %s2633_s29, %s3370_s29  }
  0x15   : > { %3327 = sst [smem:[#allocation11_spill]] %s2517_s16  ;;  %s1935_s25 = sadd.s32 4294967294, %s2545_s23  }
  0x16   : > { %3328 = sst [smem:[#allocation12_spill]] %s2521_s17  ;;  %s40_s26 = sadd.s32 1, %s2537_s21 }
  0x17   : > { %3329 = sst [smem:[#allocation13_spill]] %s2525_s18  ;;  %s43_s27 = sadd.s32 1, %s2541_s22 }
  0x18   : > { %3330 = sst [smem:[#allocation14_spill]] %s2537_s21  ;;  %p41_p0 = scmp.ge.s32.totalorder %s40_s26, 2 }
  0x19   : > { %3331 = sst [smem:[#allocation15_spill]] %s2541_s22  ;;  %s332_s28 = sadd.s32 1, %s2525_s18 }
  0x1a   : > { %p342_p1 = scmp.ne.s32.totalorder %s2525_s18, %s2521_s17  ;;  %p2695_p2 = scmp.eq.s32.totalorder %s1934_s24, 3 }
  0x1b   : > { %s3373_s26 = smov (%p41_p0, %s40_s26), 0  ;;  %s3375_s27 = smov (!%p41_p0, %s43_s27), %s2541_s22 }
  0x1c   : > { %3333 = sst [smem:[#allocation16_spill]] %s3373_s26  ;;  %s328_s13 = ssub.s32 %s2537_s21, %s3373_s26 }
  0x1d   : > { %p2706_p3 = por %p2695_p2, %p342_p1  ;;  %p45_p4 = scmp.ge.s32.totalorder %s3375_s27, 2 }
  0x1e   : > { %p348_p5 = scmp.ne.s32.totalorder %s2521_s17, %s2517_s16  ;;  %p2712_p6 = scmp.eq.s32.totalorder %s1935_s25, 3 }
  0x1f   : > { %s3334_s12 = scalar_select %p2706_p3, 1, 0 }
  0x20   : > { %s358_s11 = sadd.s32 1, %s2513_s15  ;;  %s3377_s27 = smov (%p45_p4, %s3375_s27), 0 }
  0x21   : > { %3335 = sst [smem:[#allocation17_spill]] %s3334_s12  ;;  %p2721_p7 = por %p2712_p6, %p348_p5 }
  0x22   : > { %3337 = sst [smem:[#allocation18_spill]] %s3377_s27  ;;  %p368_p8 = scmp.ne.s32.totalorder %s2513_s15, %s2509_s30 }
  0x23   : > { %s327_s21 = ssub.s32 %s2541_s22, %s3377_s27  ;;  %p374_p9 = scmp.ne.s32.totalorder %s2509_s30, %s2505_s29 }
  0x24   : > { %s329_s16 = sor.u32 %s328_s13, %s327_s21  ;;  %p356_p10 = scmp.eq.s32.totalorder %s327_s21, 0 }
  0x25   : > { %p330_p11 = scmp.eq.s32.totalorder %s329_s16, 0  ;;  %p2733_p12 = por %p368_p8, %p2695_p2 }
  0x26   : > { %s2738_s12 = scalar_select %p356_p10, %s2513_s15, %s358_s11  }
  0x27   : > { %s2741_s17 = scalar_select %p330_p11, %s2525_s18, %s332_s28  }
  0x28   : > { %3340 = sst [smem:[#allocation19_spill]] %s2738_s12  ;;  %p2745_p13 = por %p374_p9, %p2712_p6 }
  0x29   : > { %3341 = sst [smem:[#allocation20_spill]] %s2741_s17  ;;  %p1938_p0 = scmp.ge.s32.totalorder %s2545_s23, 1 }
  0x2a   : > { %p441_p1 = scmp.lt.s32.totalorder %s2545_s23, 5 }
  0x2c   : > { %p442_p4 = pnand %p1938_p0, %p441_p1 }
  0x2d   : > { %v2547_v0 = vmov (!%p442_p4), 0.0   ;;  %s3343_s1 = sld [smem:[#allocation22_spill]] (!%p442_p4)  ;;  %vm2548_vm0 = vmmov (!%p442_p4), 0   ;;  %p495_p2 = scmp.lt.s32.totalorder (!%p442_p4), %s2533_s20, 1  ;;  %vm743_vm1 = vcmask (!%p442_p4), 253952   ;;  %v2549_v12 = vmov (!%p442_p4), 0  }
  0x2e   : > { %445 = sbr.rel (%p442_p4) target bundleno = 2057 (0x809), region = 72  ;;  %2119 = vmatprep.subr.bf16.mxu0 (!%p442_p4), %v2547_v0  ;;  %2147 = vmatprep.subr.bf16.mxu1 (!%p442_p4), %v2547_v0  ;;  %p497_p5 = scmp.lt.s32.totalorder (!%p442_p4), %s2529_s19, 1  ;;  %744 = vst.msk [vmem:[#allocation2] sm:$0x1] (!%p442_p4), %vm743_vm1, %v2549_v12  ;;  %vm745_vm2 = vcmask (!%p442_p4), 261127   ;;  %v2369_v13 = vld [vmem:[%s3291_s5] sm:$0xff] (!%p442_p4)   ;;  %v509_v18 = vlaneseq (!%p442_p4) }
  0x2f   : > { %2135 = vmatprep.mubr.msk.bf16.mxu0 (!%p442_p4), %vm2548_vm0, %v2547_v0  ;;  %2159 = vmatprep.mubr.msk.bf16.mxu1 (!%p442_p4), %vm2548_vm0, %v2547_v0  ;;  %s3344_s0 = sld [smem:[#allocation21_spill]] (!%p442_p4)  ;;  %746 = vst.msk [vmem:[#allocation2 + $0x10] sm:$0x80] (!%p442_p4), %vm745_vm2, %v2549_v12  ;;  %v2370_v14 = vld [vmem:[%s3291_s5 + $0x8] sm:$0xff] (!%p442_p4)   ;;  %v2371_v15 = vld [vmem:[%s3291_s5 + $0x10] sm:$0xff] (!%p442_p4)   ;;  %v2372_v16 = vld [vmem:[%s3291_s5 + $0x18] sm:$0xff] (!%p442_p4)  }
  0x30   : > { %2148 = vmatpush3.bf16.msra.mxu1 (!%p442_p4), %v2369_v13  ;;  %v2373_v17 = vld [vmem:[%s3291_s5 + $0x20] sm:$0xff] (!%p442_p4)   ;;  %s1941_s27 = sshll.u32 (!%p442_p4), %s2529_s19, 5  ;;  %v510_v19 = vshrl.u32 (!%p442_p4), %v509_v18, 7  ;;  %s3345_s2 = sld [smem:[#allocation23_spill]] (!%p442_p4)  ;;  %vm762_vm15 = vcmask (!%p442_p4), 261121  }
  0x31   : > { %2149 = vmatprep.subr.bf16.mxu1 (!%p442_p4), %v2547_v0  ;;  %s1942_s12 = sadd.s32 (!%p442_p4), 4294967290, %s1941_s27  ;;  %s3346_s3 = sld [smem:[#allocation24_spill]] (!%p442_p4) }
  0x32   : > { %v516_v20 = vstv (!%p442_p4), %s1942_s12  ;;  %v511_v21 = vadd.s32 (!%p442_p4), 8, %v510_v19  ;;  %v512_v26 = vadd.s32 (!%p442_p4), 16, %v510_v19  ;;  %v513_v31 = vadd.s32 (!%p442_p4), 24, %v510_v19  ;;  %s3347_s4 = sld [smem:[#allocation25_spill]] (!%p442_p4)  ;;  %s2552_s22 = smov (!%p442_p4), 96  }
  0x33   : > { %v2358_v1 = vld [vmem:[%s3343_s1] sm:$0xff] (!%p442_p4)   ;;  %v2359_v2 = vld [vmem:[%s3343_s1 + $0x8] sm:$0xff] (!%p442_p4)   ;;  %v2360_v3 = vld [vmem:[%s3343_s1 + $0x10] sm:$0xff] (!%p442_p4)   ;;  %v517_v22 = vadd.s32 (!%p442_p4), %v516_v20, %v510_v19  ;;  %v514_v48 = vadd.s32 (!%p442_p4), 32, %v510_v19  ;;  %v515_v50 = vadd.s32 (!%p442_p4), 40, %v510_v19  ;;  %s3351_s14 = sld [smem:[#allocation28_spill]] (!%p442_p4) }
  0x34   : > { %2120 = vmatpush3.bf16.msra.mxu0 (!%p442_p4), %v2358_v1  ;;  %v2361_v4 = vld [vmem:[%s3343_s1 + $0x18] sm:$0xff] (!%p442_p4)   ;;  %v2362_v5 = vld [vmem:[%s3343_s1 + $0x20] sm:$0xff] (!%p442_p4)   ;;  %v2363_v6 = vld [vmem:[%s3343_s1 + $0x28] sm:$0xff] (!%p442_p4)   ;;  %2150 = vmatpush3.bf16.msra.mxu1 (!%p442_p4), %v2370_v14  ;;  %v518_v24 = vadd.s32 (!%p442_p4), %v516_v20, %v511_v21  ;;  %v519_v36 = vadd.s32 (!%p442_p4), %v516_v20, %v512_v26  ;;  %v520_v39 = vadd.s32 (!%p442_p4), %v516_v20, %v513_v31  ;;  %p2045_p6 = scmp.ne.s32.totalorder (!%p442_p4), %s2529_s19, 0 }
  0x35   : > { %2121 = vmatprep.subr.bf16.mxu0 %v2547_v0  ;;  %s496_s28 = scalar_select %p495_p2, %s2533_s20, 1  ;;  %v2364_v7 = vld [vmem:[%s3343_s1 + $0x30] sm:$0xff]   ;;  %v2365_v8 = vld [vmem:[%s3343_s1 + $0x38] sm:$0xff]   ;;  %2151 = vmatprep.subr.bf16.mxu1 %v2547_v0  ;;  %vm523_vm3 = vcmp.ge.s32.totalorder %v517_v22, 0  ;;  %vm529_vm4 = vcmp.lt.s32.totalorder %v517_v22, 56  ;;  %v521_v59 = vadd.s32 %v516_v20, %v514_v48  ;;  %v522_v60 = vadd.s32 %v516_v20, %v515_v50 }
  0x36   : > { %s498_s24 = scalar_select %p497_p5, %s2529_s19, 1  ;;  %v2827_v23 = vld [vmem:[%s3345_s2] ss:$0 sm:$0xff]  ;;  %vm524_vm5 = vcmp.ge.s32.totalorder %v518_v24, 0  ;;  %vm530_vm6 = vcmp.lt.s32.totalorder %v518_v24, 56  ;;  %vm535_vm7 = vmand %vm523_vm3, %vm529_vm4  ;;  %vm525_vm9 = vcmp.ge.s32.totalorder %v519_v36, 0 }
  0x37   : > { %s2248_s16 = smul.u32 12, %s496_s28  ;;  %v2833_v29 = vld [vmem:[%s3346_s3] ss:$0 sm:$0xff]  ;;  %vm536_vm8 = vmand %vm524_vm5, %vm530_vm6  ;;  %v2845_v42 = vsel %vm535_vm7, 1.0, %v2547_v0  ;;  %vm531_vm10 = vcmp.lt.s32.totalorder %v519_v36, 56  ;;  %vm526_vm11 = vcmp.ge.s32.totalorder %v520_v39, 0 }
  0x38   : > { %2122 = vmatpush3.bf16.msra.mxu0 %v2359_v2  ;;  %s2247_s21 = smul.u32 6, %s498_s24  ;;  %2152 = vmatpush3.bf16.msra.mxu1 %v2371_v15  ;;  %v2839_v35 = vld [vmem:[%s3347_s4] ss:$0 sm:$0xff]  ;;  %v2848_v43 = vsel %vm536_vm8, 1.0, %v2547_v0  ;;  %vm532_vm12 = vcmp.lt.s32.totalorder %v520_v39, 56  ;;  %vm537_vm13 = vmand %vm525_vm9, %vm531_vm10  ;;  %vm527_vm1 = vcmp.ge.s32.totalorder %v521_v59, 0 }
  0x39   : > { %2123 = vmatprep.subr.bf16.mxu0 %v2547_v0  ;;  %2153 = vmatprep.subr.bf16.mxu1 %v2547_v0  ;;  %vm538_vm14 = vmand %vm526_vm11, %vm532_vm12  ;;  %v2866_v1 = vsel %vm537_vm13, 1.0, %v2547_v0  ;;  %vm533_vm2 = vcmp.lt.s32.totalorder %v521_v59, 56  ;;  %vm528_vm3 = vcmp.ge.s32.totalorder %v522_v60, 0  ;;  %vm534_vm4 = vcmp.lt.s32.totalorder %v522_v60, 56  ;;  %s2550_s28 = smov 32   ;;  %s3314_s24 = smov 64  }
  0x3a   : > { %s501_s13 = sadd.s32 %s2248_s16, %s2247_s21  ;;  %v2869_v2 = vsel %vm538_vm14, 1.0, %v2547_v0  ;;  %vm539_vm5 = vmand %vm527_vm1, %vm533_vm2  ;;  %vm753_vm7 = vcmask 1040384   ;;  %vm764_vm8 = vcmask 261120   ;;  %vm983_vm9 = vcmask 1044480   ;;  %s3349_s16 = sld [smem:[#allocation27_spill]] }
  0x3b   : > { %s1940_s17 = sshll.u32 %s501_s13, 2  ;;  %vm540_vm6 = vmand %vm528_vm3, %vm534_vm4  ;;  %v2891_v20 = vsel %vm539_vm5, 1.0, %v2547_v0  ;;  %vm766_vm10 = vcmask 260096   ;;  %vm778_vm11 = vcmask 1046528   ;;  %vm792_vm12 = vcmask 1045504   ;;  %s3350_s21 = sld [smem:[#allocation12_spill]] }
  0x3c   : > { %2124 = vmatpush3.bf16.msra.mxu0 %v2360_v3  ;;  %s503_s15 = scalar_lea.vmem %s3344_s0, %s1940_s17  ;;  %2154 = vmatpush3.bf16.msra.mxu1 %v2372_v16  ;;  %v2894_v21 = vsel %vm540_vm6, 1.0, %v2547_v0  ;;  %vm813_vm13 = vcmask 523264   ;;  %vm875_vm14 = vcmask 785408   ;;  %vm1543_vm1 = vcmask 1048320   ;;  %s3352_s17 = sand.u32 1, %s2509_s30  }
  0x3d   : > { %2125 = vmatprep.subr.bf16.mxu0 %v2547_v0  ;;  %v2366_v9 = vld [vmem:[%s503_s15] sm:$0xff]   ;;  %v2367_v10 = vld [vmem:[%s503_s15 + $0x8] sm:$0xff]   ;;  %v2368_v11 = vld [vmem:[%s503_s15 + $0x10] sm:$0x3f]   ;;  %2155 = vmatprep.subr.bf16.mxu1 %v2547_v0  ;;  %vm1699_vm2 = vcmask 1041408  }
  0x40   : > { %2126 = vmatpush3.bf16.msra.mxu0 %v2361_v4  ;;  %2156 = vmatpush3.bf16.msra.mxu1 %v2373_v17 }
  0x41   : > { %2127 = vmatprep.subr.bf16.mxu0 %v2547_v0  ;;  %2157 = vmatprep.subr.bf16.mxu1 %v2547_v0 }
  0x44   : > { %2128 = vmatpush3.bf16.msra.mxu0 %v2362_v5 }
  0x45   : > { %2129 = vmatprep.subr.bf16.mxu0 %v2547_v0 }
  0x48   : > { %2130 = vmatpush3.bf16.msra.mxu0 %v2363_v6 }
  0x49   : > { %2131 = vmatprep.subr.bf16.mxu0 %v2547_v0 }
  0x4c   : > { %2132 = vmatpush3.bf16.msra.mxu0 %v2364_v7 }
  0x4d   : > { %2133 = vmatprep.subr.bf16.mxu0 %v2547_v0 }
  0x50   : > { %2134 = vmatpush3.bf16.msra.mxu0 %v2365_v8 }
  0x51   : > { %2195 = vmatprep.subr.bf16.mxu0 %v2547_v0 }
  0x53   : > { %2136 = vmatmul.mubr.bf16.vlgmr.msra.gmra.mrb[0].mxu0 %v2366_v9 }
  0x54   : > { %2139 = vmatprep.mubr.msk.bf16.mxu0 %vm2548_vm0, %v2547_v0 }
  0x5b   : > { %2140 = vmatmul.mubr.bf16.gmra.mrb[4].mxu0 %v2367_v10 }
  0x5c   : > { %2143 = vmatprep.mubr.msk.bf16.mxu0 %vm2548_vm0, %v2547_v0 }
  0x63   : > { %2144 = vmatmul.mubr.bf16.gmra.mrb[8].mxu0 %v2368_v11 }
  0x64   : > { %2207 = vmatprep.mubr.msk.bf16.mxu0 %vm2548_vm0, %v2547_v0 }
 0x126   : > { %v682_v25 = vpop.f32.mrb[0].mxu0 }
 0x127   : > { %v683_v27 = vadd.f32 %v2827_v23, %v682_v25  ;;  %v2137_v28 = vpop.f32.mrb[1].mxu0  ;;  %v2374_v25 = vld [vmem:[%s3291_s5 + $0x28] sm:$0xff]  }
 0x128   : > { %v685_v30 = vpop.f32.mrb[2].mxu0  ;;  %2158 = vmatpush3.bf16.msra.mxu1 %v2374_v25  ;;  %v1974_v25 = vld [vmem:[%s3294_s8] ss:$0 sm:$0xff] }
 0x129   : > { %v705_v32 = vmax.f32 %v683_v27, 0.0  ;;  %v686_v33 = vadd.f32 %v2827_v23, %v685_v30  ;;  %v2138_v34 = vpop.f32.mrb[3].mxu0  ;;  %2171 = vmatprep.subr.bf16.mxu1 %v2547_v0 }
 0x12b   : > { %v718_v37 = vmul.f32 %v2833_v29, %v705_v32  ;;  %v706_v38 = vmax.f32 %v686_v33, 0.0 }
 0x12d   : > { %v731_v40 = vadd.f32 %v2839_v35, %v718_v37  ;;  %v719_v41 = vmul.f32 %v2833_v29, %v706_v38 }
 0x12e   : > { %v690_v44 = vpop.f32.mrb[4].mxu0 }
 0x12f   : > { %v732_v45 = vadd.f32 %v2839_v35, %v719_v41  ;;  %v691_v46 = vadd.f32 %v2827_v23, %v690_v44  ;;  %v2141_v47 = vpop.f32.mrb[5].mxu0  ;;  %v2853_v51 = vmul.f32 %v2845_v42, %v731_v40 }
 0x130   : > { %v693_v49 = vpop.f32.mrb[6].mxu0 }
 0x131   : > { %v2856_v52 = vmul.f32 %v2848_v43, %v732_v45  ;;  %v707_v53 = vmax.f32 %v691_v46, 0.0  ;;  %v694_v54 = vadd.f32 %v2827_v23, %v693_v49  ;;  %v2142_v55 = vpop.f32.mrb[7].mxu0 }
 0x133   : > { %v747_v56 = vpack.c.bf16 %v2856_v52, %v2853_v51  ;;  %v720_v57 = vmul.f32 %v2833_v29, %v707_v53  ;;  %v708_v58 = vmax.f32 %v694_v54, 0.0 }
 0x135   : > { %v754_v61 = vrot.slane %v747_v56, 7  ;;  %v733_v62 = vadd.f32 %v2839_v35, %v720_v57  ;;  %v721_v63 = vmul.f32 %v2833_v29, %v708_v58  ;;  %v1536_v22 = vrot.slane %v747_v56, 3 }
 0x136   : > { %v698_v3 = vpop.f32.mrb[8].mxu0 }
 0x137   : > { %763 = vst.msk [vmem:[#allocation2] sm:$0xfe] %vm762_vm15, %v754_v61  ;;  %v734_v4 = vadd.f32 %v2839_v35, %v721_v63  ;;  %v699_v5 = vadd.f32 %v2827_v23, %v698_v3  ;;  %v2145_v6 = vpop.f32.mrb[9].mxu0  ;;  %v2875_v8 = vmul.f32 %v2866_v1, %v733_v62 }
 0x138   : > { %v701_v7 = vpop.f32.mrb[10].mxu0  ;;  %v2377_v6 = vld [vmem:[%s3291_s5 + $0x40] sm:$0xff]  }
 0x139   : > { %v2878_v9 = vmul.f32 %v2869_v2, %v734_v4  ;;  %v709_v10 = vmax.f32 %v699_v5, 0.0  ;;  %v702_v11 = vadd.f32 %v2827_v23, %v701_v7  ;;  %v2146_v12 = vpop.f32.mrb[11].mxu0  ;;  %v2375_v4 = vld [vmem:[%s3291_s5 + $0x30] sm:$0xff]   ;;  %v2376_v5 = vld [vmem:[%s3291_s5 + $0x38] sm:$0xff]   ;;  %v2378_v7 = vld [vmem:[%s3291_s5 + $0x48] sm:$0xff]  }
 0x13a   : > { %v1963_v12 = vld [vmem:[%s3292_s6] ss:$0 sm:$0xff] }
 0x13b   : > { %v2883_v13 = vpack.c.bf16 %v2878_v9, %v2875_v8  ;;  %v722_v14 = vmul.f32 %v2833_v29, %v709_v10  ;;  %v710_v15 = vmax.f32 %v702_v11, 0.0  ;;  %v2379_v10 = vld [vmem:[%s3291_s5 + $0x50] sm:$0xff]   ;;  %v2380_v11 = vld [vmem:[%s3291_s5 + $0x58] sm:$0xff]  }
 0x13d   : > { %v755_v16 = vrot.slane %v2883_v13, 7  ;;  %v735_v17 = vadd.f32 %v2839_v35, %v722_v14  ;;  %v723_v18 = vmul.f32 %v2833_v29, %v710_v15  ;;  %v1537_v19 = vrot.slane %v2883_v13, 3 }
 0x13e   : > { %v771_v31 = vld [vmem:[#allocation2] sm:$0xfe] }
 0x13f   : > { %v756_v23 = vsel %vm753_vm7, %v754_v61, %v755_v16  ;;  %v736_v24 = vadd.f32 %v2839_v35, %v723_v18  ;;  %v2905_v26 = vsel %vm983_vm9, %v1536_v22, %v1537_v19  ;;  %v2908_v27 = vmul.f32 %v2891_v20, %v735_v17  ;;  %v773_v36 = vld [vmem:[#allocation2] sm:$0xfc]  ;;  %v1973_v17 = vld [vmem:[%s3293_s7] ss:$0 sm:$0xff] }
 0x140   : > { %765 = vst.msk [vmem:[#allocation2 + $0x8] sm:$0xff] %vm764_vm8, %v756_v23  ;;  %v779_v34 = vrot.slane %v771_v31, 1  ;;  %v793_v39 = vrot.slane %v773_v36, 2  ;;  %v768_v50 = vld [vmem:[#allocation2] sm:$0xff] }
 0x141   : > { %v2911_v28 = vmul.f32 %v2894_v21, %v736_v24 }
 0x143   : > { %v749_v29 = vpack.c.bf16 %v2911_v28, %v2908_v27 }
 0x145   : > { %v757_v30 = vrot.slane %v749_v29, 7 }
 0x147   : > { %v758_v32 = vsel %vm753_vm7, %v755_v16, %v757_v30  ;;  %v769_v33 = vld [vmem:[#allocation2 + $0x8] sm:$0xff] }
 0x148   : > { %767 = vst.msk [vmem:[#allocation2 + $0x10] sm:$0x7f] %vm766_vm10, %v758_v32  ;;  %v780_v35 = vrot.slane %v769_v33, 1  ;;  %v794_v38 = vrot.slane %v769_v33, 2 }
 0x14a   : > { %v781_v37 = vsel %vm778_vm11, %v779_v34, %v780_v35  ;;  %v795_v40 = vsel %vm792_vm12, %v793_v39, %v794_v38 }
 0x14b   : > { %784 = vrot.lane.b32.xlu0 %v781_v37, %s2550_s28 }
 0x14f   : > { %798 = vrot.lane.b32.xlu0 %v795_v40, %s3314_s24  ;;  %v772_v41 = vld [vmem:[#allocation2 + $0x10] sm:$0x7f] }
 0x150   : > { %v774_v44 = vld [vmem:[#allocation2 + $0x10] sm:$0xff]  ;;  %v782_v45 = vrot.slane %v772_v41, 1 }
 0x151   : > { %v796_v47 = vrot.slane %v774_v44, 2  ;;  %v770_v62 = vld [vmem:[#allocation2 + $0x10] sm:$0x3f] }
 0x152   : > { %v783_v46 = vsel %vm778_vm11, %v780_v35, %v782_v45 }
 0x153   : > { %788 = vrot.lane.b32.xlu0 %v782_v45, %s2550_s28  ;;  %786 = vrot.lane.b32.xlu1 %v783_v46, %s2550_s28  ;;  %v797_v48 = vsel %vm792_vm12, %v794_v38, %v796_v47 }
 0x157   : > { %999 = vrot.lane.b32.xlu0 %v2853_v51, %s2552_s22  ;;  %800 = vrot.lane.b32.xlu1 %v797_v48, %s3314_s24 }
 0x15b   : > { %1003 = vrot.lane.b32.xlu0 %v2875_v8, %s2552_s22  ;;  %802 = vrot.lane.b32.xlu1 %v796_v47, %s3314_s24 }
 0x15f   : > { %1007 = vrot.lane.b32.xlu0 %v2908_v27, %s2552_s22  ;;  %1001 = vrot.lane.b32.xlu1 %v2856_v52, %s2552_s22 }
 0x163   : > { %1005 = vrot.lane.b32.xlu1 %v2878_v9, %s2552_s22 }
 0x167   : > { %1009 = vrot.lane.b32.xlu1 %v2911_v28, %s2552_s22  ;;  %s3315_s22 = sand.u32 1, %s3350_s21  }
 0x168   : > { %s1939_s27 = sshll.u32 %s3315_s22, 4 }
 0x169   : > { %s488_s12 = scalar_lea.vmem [#allocation4], %s1939_s27 }
 0x1bd   : > { %v785_v49 = vpop.permute.xlu0 %784 }
 0x1be   : > { %v806_v53 = vsel %vm764_vm8, %v768_v50, %v785_v49 }
 0x1c1   : > { %v799_v54 = vpop.permute.xlu0 %798 }
 0x1c2   : > { %v815_v55 = vsel %vm813_vm13, %v806_v53, %v799_v54 }
 0x1c3   : > { %2160 = vmatmul.mubr.msk.bf16.vlgmr.msra.gmra.mrb[0].mxu1 %vm875_vm14, %v815_v55 }
 0x1c4   : > { %2163 = vmatprep.mubr.msk.bf16.mxu1 %vm2548_vm0, %v2547_v0  ;;  %2172 = vmatpush3.bf16.msra.mxu1 %v2375_v4 }
 0x1c5   : > { %v787_v56 = vpop.permute.xlu1 %786  ;;  %v789_v60 = vpop.permute.xlu0 %788  ;;  %2173 = vmatprep.subr.bf16.mxu1 %v2547_v0 }
 0x1c6   : > { %v809_v57 = vsel %vm764_vm8, %v769_v33, %v787_v56  ;;  %v812_v63 = vsel %vm764_vm8, %v770_v62, %v789_v60 }
 0x1c8   : > { %2174 = vmatpush3.bf16.msra.mxu1 %v2376_v5 }
 0x1c9   : > { %v801_v58 = vpop.permute.xlu1 %800  ;;  %2175 = vmatprep.subr.bf16.mxu1 %v2547_v0  ;;  %v1000_v39 = vpop.permute.xlu0 %999 }
 0x1ca   : > { %v817_v59 = vsel %vm813_vm13, %v809_v57, %v801_v58 }
 0x1cb   : > { %2164 = vmatmul.mubr.msk.bf16.gmra.mrb[4].mxu1 %vm875_vm14, %v817_v59 }
 0x1cc   : > { %2167 = vmatprep.mubr.msk.bf16.mxu1 %vm2548_vm0, %v2547_v0  ;;  %2176 = vmatpush3.bf16.msra.mxu1 %v2377_v6 }
 0x1cd   : > { %v803_v61 = vpop.permute.xlu1 %802  ;;  %2177 = vmatprep.subr.bf16.mxu1 %v2547_v0 }
 0x1ce   : > { %v819_v3 = vsel %vm813_vm13, %v812_v63, %v803_v61 }
 0x1d0   : > { %2178 = vmatpush3.bf16.msra.mxu1 %v2378_v7 }
 0x1d1   : > { %2179 = vmatprep.subr.bf16.mxu1 %v2547_v0  ;;  %v1002_v46 = vpop.permute.xlu1 %1001 }
 0x1d3   : > { %2168 = vmatmul.mubr.msk.bf16.gmra.mrb[8].mxu1 %vm875_vm14, %v819_v3  ;;  %v1004_v3 = vpop.permute.xlu0 %1003 }
 0x1d4   : > { %2183 = vmatprep.mubr.msk.bf16.mxu1 %vm2548_vm0, %v2547_v0  ;;  %2180 = vmatpush3.bf16.msra.mxu1 %v2379_v10 }
 0x1d5   : > { %2181 = vmatprep.subr.bf16.mxu1 %v2547_v0  ;;  %v1006_v10 = vpop.permute.xlu1 %1005 }
 0x1d8   : > { %2182 = vmatpush3.bf16.msra.mxu1 %v2380_v11 }
 0x296   : > { %v916_v14 = vpop.f32.mrb[0].mxu1 }
 0x297   : > { %v917_v15 = vadd.f32 %v1963_v12, %v916_v14  ;;  %v2161_v16 = vpop.f32.mrb[1].mxu1 }
 0x298   : > { %v919_v18 = vpop.f32.mrb[2].mxu1 }
 0x299   : > { %v939_v22 = vmax.f32 %v917_v15, 0.0  ;;  %v920_v23 = vadd.f32 %v1963_v12, %v919_v18  ;;  %v2162_v24 = vpop.f32.mrb[3].mxu1 }
 0x29b   : > { %v952_v29 = vmul.f32 %v1973_v17, %v939_v22  ;;  %v940_v30 = vmax.f32 %v920_v23, 0.0 }
 0x29d   : > { %v965_v31 = vadd.f32 %v1974_v25, %v952_v29  ;;  %v953_v32 = vmul.f32 %v1973_v17, %v940_v30 }
 0x29e   : > { %v924_v33 = vpop.f32.mrb[4].mxu1 }
 0x29f   : > { %v971_v34 = vmul.f32 %v2845_v42, %v965_v31  ;;  %v966_v35 = vadd.f32 %v1974_v25, %v953_v32  ;;  %v925_v36 = vadd.f32 %v1963_v12, %v924_v33  ;;  %v2165_v37 = vpop.f32.mrb[5].mxu1 }
 0x2a0   : > { %v927_v38 = vpop.f32.mrb[6].mxu1  ;;  %v1008_v37 = vpop.permute.xlu0 %1007 }
 0x2a1   : > { %v972_v40 = vmul.f32 %v2848_v43, %v966_v35  ;;  %v941_v41 = vmax.f32 %v925_v36, 0.0  ;;  %v928_v44 = vadd.f32 %v1963_v12, %v927_v38  ;;  %v2166_v45 = vpop.f32.mrb[7].mxu1  ;;  %v1017_v47 = vadd.f32 %v1000_v39, %v971_v34  ;;  %v1010_v38 = vpop.permute.xlu1 %1009 }
 0x2a3   : > { %v977_v48 = vpack.c.bf16 %v972_v40, %v971_v34  ;;  %v1018_v49 = vadd.f32 %v1002_v46, %v972_v40  ;;  %v954_v50 = vmul.f32 %v1973_v17, %v941_v41  ;;  %v942_v53 = vmax.f32 %v928_v44, 0.0 }
 0x2a5   : > { %v1023_v54 = vpack.c.bf16 %v1018_v49, %v1017_v47  ;;  %v967_v55 = vadd.f32 %v1974_v25, %v954_v50  ;;  %v955_v56 = vmul.f32 %v1973_v17, %v942_v53  ;;  %v984_v22 = vrot.slane %v977_v48, 3 }
 0x2a6   : > { %v932_v57 = vpop.f32.mrb[8].mxu1 }
 0x2a7   : > { %v1029_v58 = vrot.slane %v1023_v54, 7  ;;  %v973_v59 = vmul.f32 %v2866_v1, %v967_v55  ;;  %v968_v60 = vadd.f32 %v1974_v25, %v955_v56  ;;  %v933_v61 = vadd.f32 %v1963_v12, %v932_v57  ;;  %v2169_v62 = vpop.f32.mrb[9].mxu1 }
 0x2a8   : > { %v935_v63 = vpop.f32.mrb[10].mxu1 }
 0x2a9   : > { %1037 = vst.msk [vmem:[#allocation2] sm:$0xfe] %vm762_vm15, %v1029_v58  ;;  %v974_v4 = vmul.f32 %v2869_v2, %v968_v60  ;;  %v943_v5 = vmax.f32 %v933_v61, 0.0  ;;  %v936_v6 = vadd.f32 %v1963_v12, %v935_v63  ;;  %v2170_v7 = vpop.f32.mrb[11].mxu1  ;;  %v1019_v11 = vadd.f32 %v1004_v3, %v973_v59 }
 0x2ab   : > { %v978_v14 = vpack.c.bf16 %v974_v4, %v973_v59  ;;  %v1020_v15 = vadd.f32 %v1006_v10, %v974_v4  ;;  %v956_v16 = vmul.f32 %v1973_v17, %v943_v5  ;;  %v944_v18 = vmax.f32 %v936_v6, 0.0 }
 0x2ad   : > { %v1024_v23 = vpack.c.bf16 %v1020_v15, %v1019_v11  ;;  %v969_v24 = vadd.f32 %v1974_v25, %v956_v16  ;;  %v957_v29 = vmul.f32 %v1973_v17, %v944_v18  ;;  %v985_v30 = vrot.slane %v978_v14, 3  ;;  %v2381_v15 = vld [vmem:[%s3291_s5 + $0x60] sm:$0xff]   ;;  %v2382_v16 = vld [vmem:[%s3291_s5 + $0x68] sm:$0xff]   ;;  %v2383_v18 = vld [vmem:[%s3291_s5 + $0x70] sm:$0xff]  }
 0x2ae   : > { %2196 = vmatpush3.bf16.msra.mxu0 %v2381_v15 }
 0x2af   : > { %v1030_v31 = vrot.slane %v1024_v23, 7  ;;  %v975_v32 = vmul.f32 %v2891_v20, %v969_v24  ;;  %v970_v33 = vadd.f32 %v1974_v25, %v957_v29  ;;  %v986_v34 = vsel %vm983_vm9, %v984_v22, %v985_v30  ;;  %2197 = vmatprep.subr.bf16.mxu0 %v2547_v0  ;;  %v2384_v22 = vld [vmem:[%s3291_s5 + $0x78] sm:$0xff]   ;;  %v2385_v23 = vld [vmem:[%s3291_s5 + $0x80] sm:$0xff]   ;;  %v2386_v24 = vld [vmem:[%s3291_s5 + $0x88] sm:$0xff]  }
 0x2b0   : > { %991 = vst.msk [vmem:[#allocation3] sm:$0xff] %vm764_vm8, %v986_v34  ;;  %v1045_v45 = vld [vmem:[#allocation2] sm:$0xfc]  ;;  %v1988_v29 = vld [vmem:[%s3292_s6 + $0x1] ss:$0 sm:$0xff] }
 0x2b1   : > { %v1031_v12 = vsel %vm753_vm7, %v1029_v58, %v1030_v31  ;;  %v979_v35 = vpack.c.bf16 %v975_v32, %v975_v32  ;;  %v976_v36 = vmul.f32 %v2894_v21, %v970_v33  ;;  %v1021_v39 = vadd.f32 %v1008_v37, %v975_v32  ;;  %v1043_v46 = vld [vmem:[#allocation2] sm:$0xfe] }
 0x2b2   : > { %1038 = vst.msk [vmem:[#allocation2 + $0x8] sm:$0xff] %vm764_vm8, %v1031_v12  ;;  %v1063_v49 = vrot.slane %v1045_v45, 2  ;;  %v1050_v53 = vrot.slane %v1043_v46, 1  ;;  %v1040_v63 = vld [vmem:[#allocation2] sm:$0xff]  ;;  %2198 = vmatpush3.bf16.msra.mxu0 %v2382_v16 }
 0x2b3   : > { %v1022_v17 = vadd.f32 %v1010_v38, %v976_v36  ;;  %v987_v40 = vrot.slane %v979_v35, 3  ;;  %2199 = vmatprep.subr.bf16.mxu0 %v2547_v0  ;;  %v1999_v33 = vld [vmem:[%s3293_s7 + $0x1] ss:$0 sm:$0xff] }
 0x2b4   : > { %v2001_v37 = vld [vmem:[%s3294_s8 + $0x1] ss:$0 sm:$0xff] }
 0x2b5   : > { %v1025_v41 = vpack.c.bf16 %v1022_v17, %v1021_v39  ;;  %v988_v44 = vsel %vm983_vm9, %v985_v30, %v987_v40 }
 0x2b6   : > { %992 = vst.msk [vmem:[#allocation3 + $0x8] sm:$0xff] %vm764_vm8, %v988_v44  ;;  %2200 = vmatpush3.bf16.msra.mxu0 %v2383_v18 }
 0x2b7   : > { %v1032_v25 = vrot.slane %v1025_v41, 7  ;;  %2201 = vmatprep.subr.bf16.mxu0 %v2547_v0 }
 0x2b9   : > { %v1033_v47 = vsel %vm753_vm7, %v1030_v31, %v1032_v25  ;;  %v1041_v48 = vld [vmem:[#allocation2 + $0x8] sm:$0xff] }
 0x2ba   : > { %1039 = vst.msk [vmem:[#allocation2 + $0x10] sm:$0x7f] %vm766_vm10, %v1033_v47  ;;  %v1064_v50 = vrot.slane %v1041_v48, 2  ;;  %v1051_v54 = vrot.slane %v1041_v48, 1  ;;  %2202 = vmatpush3.bf16.msra.mxu0 %v2384_v22 }
 0x2bb   : > { %2203 = vmatprep.subr.bf16.mxu0 %v2547_v0 }
 0x2bc   : > { %v1065_v55 = vsel %vm792_vm12, %v1063_v49, %v1064_v50  ;;  %v1052_v56 = vsel %vm778_vm11, %v1050_v53, %v1051_v54 }
 0x2bd   : > { %1068 = vrot.lane.b32.xlu1 %v1065_v55, %s3314_s24  ;;  %1055 = vrot.lane.b32.xlu0 %v1052_v56, %s2550_s28 }
 0x2be   : > { %2204 = vmatpush3.bf16.msra.mxu0 %v2385_v23 }
 0x2bf   : > { %2205 = vmatprep.subr.bf16.mxu0 %v2547_v0 }
 0x2c1   : > { %v1046_v57 = vld [vmem:[#allocation2 + $0x10] sm:$0xff] }
 0x2c2   : > { %v1044_v58 = vld [vmem:[#allocation2 + $0x10] sm:$0x7f]  ;;  %v1066_v59 = vrot.slane %v1046_v57, 2  ;;  %2206 = vmatpush3.bf16.msra.mxu0 %v2386_v24 }
 0x2c3   : > { %v1053_v60 = vrot.slane %v1044_v58, 1  ;;  %v1042_v7 = vld [vmem:[#allocation2 + $0x10] sm:$0x3f]  ;;  %2239 = vmatprep.subr.bf16.mxu0 %v2547_v0 }
 0x2c4   : > { %v1067_v61 = vsel %vm792_vm12, %v1064_v50, %v1066_v59 }
 0x2c5   : > { %v1054_v62 = vsel %vm778_vm11, %v1051_v54, %v1053_v60  ;;  %1070 = vrot.lane.b32.xlu1 %v1067_v61, %s3314_s24 }
 0x2c6   : > { %1057 = vrot.lane.b32.xlu0 %v1054_v62, %s2550_s28 }
 0x2c9   : > { %1072 = vrot.lane.b32.xlu1 %v1066_v59, %s3314_s24 }
 0x2ca   : > { %1059 = vrot.lane.b32.xlu0 %v1053_v60, %s2550_s28 }
 0x2cd   : > { %1271 = vrot.lane.b32.xlu1 %v2856_v52, %s3314_s24 }
 0x2ce   : > { %1269 = vrot.lane.b32.xlu0 %v2853_v51, %s3314_s24 }
 0x2d1   : > { %1275 = vrot.lane.b32.xlu1 %v2878_v9, %s3314_s24 }
 0x2d2   : > { %1273 = vrot.lane.b32.xlu0 %v2875_v8, %s3314_s24 }
 0x2d5   : > { %1279 = vrot.lane.b32.xlu1 %v2911_v28, %s3314_s24 }
 0x2d6   : > { %1277 = vrot.lane.b32.xlu0 %v2908_v27, %s3314_s24 }
 0x32f   : > { %v1056_v3 = vpop.permute.xlu0 %1055  ;;  %v1069_v4 = vpop.permute.xlu1 %1068 }
 0x330   : > { %v1076_v52 = vsel %vm764_vm8, %v1040_v63, %v1056_v3 }
 0x331   : > { %v1084_v5 = vsel %vm813_vm13, %v1076_v52, %v1069_v4 }
 0x332   : > { %2184 = vmatmul.mubr.msk.bf16.vlgmr.msra.gmra.mrb[12].mxu1 %vm875_vm14, %v1084_v5 }
 0x333   : > { %2187 = vmatprep.mubr.msk.bf16.mxu1 %vm2548_vm0, %v2547_v0 }
 0x337   : > { %v1071_v51 = vpop.permute.xlu1 %1070 }
 0x338   : > { %v1058_v8 = vpop.permute.xlu0 %1057 }
 0x339   : > { %v1079_v9 = vsel %vm764_vm8, %v1041_v48, %v1058_v8 }
 0x33a   : > { %v1086_v28 = vsel %vm813_vm13, %v1079_v9, %v1071_v51 }
 0x33b   : > { %2188 = vmatmul.mubr.msk.bf16.gmra.mrb[16].mxu1 %vm875_vm14, %v1086_v28  ;;  %v1073_v10 = vpop.permute.xlu1 %1072 }
 0x33c   : > { %v1060_v6 = vpop.permute.xlu0 %1059  ;;  %2191 = vmatprep.mubr.msk.bf16.mxu1 %vm2548_vm0, %v2547_v0 }
 0x33d   : > { %v1082_v11 = vsel %vm764_vm8, %v1042_v7, %v1060_v6 }
 0x33e   : > { %v1088_v14 = vsel %vm813_vm13, %v1082_v11, %v1073_v10 }
 0x33f   : > { %v1272_v55 = vpop.permute.xlu1 %1271 }
 0x340   : > { %v1270_v48 = vpop.permute.xlu0 %1269 }
 0x343   : > { %2192 = vmatmul.mubr.msk.bf16.gmra.mrb[20].mxu1 %vm875_vm14, %v1088_v14  ;;  %v1276_v14 = vpop.permute.xlu1 %1275 }
 0x344   : > { %v1274_v28 = vpop.permute.xlu0 %1273 }
 0x405   : > { %v1186_v30 = vpop.f32.mrb[12].mxu1 }
 0x406   : > { %v1187_v31 = vadd.f32 %v1988_v29, %v1186_v30  ;;  %v2185_v32 = vpop.f32.mrb[13].mxu1 }
 0x407   : > { %v1189_v34 = vpop.f32.mrb[14].mxu1 }
 0x408   : > { %v1209_v12 = vmax.f32 %v1187_v31, 0.0  ;;  %v1190_v35 = vadd.f32 %v1988_v29, %v1189_v34  ;;  %v2186_v36 = vpop.f32.mrb[15].mxu1 }
 0x40a   : > { %v1223_v38 = vmul.f32 %v1999_v33, %v1209_v12  ;;  %v1210_v39 = vmax.f32 %v1190_v35, 0.0 }
 0x40c   : > { %v1237_v17 = vadd.f32 %v2001_v37, %v1223_v38  ;;  %v1224_v40 = vmul.f32 %v1999_v33, %v1210_v39 }
 0x40e   : > { %v1194_v41 = vpop.f32.mrb[16].mxu1  ;;  %v1243_v44 = vmul.f32 %v2845_v42, %v1237_v17  ;;  %v1238_v25 = vadd.f32 %v2001_v37, %v1224_v40  ;;  %v1280_v17 = vpop.permute.xlu1 %1279 }
 0x40f   : > { %v1195_v45 = vadd.f32 %v1988_v29, %v1194_v41  ;;  %v2189_v46 = vpop.f32.mrb[17].mxu1  ;;  %v1278_v40 = vpop.permute.xlu0 %1277 }
 0x410   : > { %v1197_v47 = vpop.f32.mrb[18].mxu1  ;;  %v1244_v49 = vmul.f32 %v2848_v43, %v1238_v25  ;;  %v1287_v56 = vadd.f32 %v1270_v48, %v1243_v44 }
 0x411   : > { %v1211_v50 = vmax.f32 %v1195_v45, 0.0  ;;  %v1198_v53 = vadd.f32 %v1988_v29, %v1197_v47  ;;  %v2190_v54 = vpop.f32.mrb[19].mxu1 }
 0x412   : > { %v1288_v57 = vadd.f32 %v1272_v55, %v1244_v49  ;;  %v1249_v60 = vpack.c.bf16 %v1244_v49, %v1243_v44 }
 0x413   : > { %v1225_v58 = vmul.f32 %v1999_v33, %v1211_v50  ;;  %v1212_v59 = vmax.f32 %v1198_v53, 0.0 }
 0x414   : > { %v1293_v61 = vpack.c.bf16 %v1288_v57, %v1287_v56  ;;  %v1255_v24 = vrot.slane %v1249_v60, 3 }
 0x415   : > { %v1239_v62 = vadd.f32 %v2001_v37, %v1225_v58  ;;  %v1226_v63 = vmul.f32 %v1999_v33, %v1212_v59 }
 0x416   : > { %v1202_v3 = vpop.f32.mrb[20].mxu1  ;;  %v1299_v4 = vrot.slane %v1293_v61, 7 }
 0x417   : > { %v1245_v52 = vmul.f32 %v2866_v1, %v1239_v62  ;;  %v1240_v5 = vadd.f32 %v2001_v37, %v1226_v63  ;;  %v1203_v51 = vadd.f32 %v1988_v29, %v1202_v3  ;;  %v2193_v8 = vpop.f32.mrb[21].mxu1 }
 0x418   : > { %v1205_v9 = vpop.f32.mrb[22].mxu1  ;;  %1307 = vst.msk [vmem:[#allocation2] sm:$0xfe] %vm762_vm15, %v1299_v4  ;;  %vm1266_vm15 = vcmask 523520  }
 0x419   : > { %v1246_v6 = vmul.f32 %v2869_v2, %v1240_v5  ;;  %v1213_v7 = vmax.f32 %v1203_v51, 0.0  ;;  %v1206_v10 = vadd.f32 %v1988_v29, %v1205_v9  ;;  %v2194_v11 = vpop.f32.mrb[23].mxu1  ;;  %v1289_v15 = vadd.f32 %v1274_v28, %v1245_v52 }
 0x41b   : > { %v1290_v16 = vadd.f32 %v1276_v14, %v1246_v6  ;;  %v1227_v18 = vmul.f32 %v1999_v33, %v1213_v7  ;;  %v1214_v22 = vmax.f32 %v1206_v10, 0.0  ;;  %v1250_v23 = vpack.c.bf16 %v1246_v6, %v1245_v52 }
 0x41d   : > { %v1294_v30 = vpack.c.bf16 %v1290_v16, %v1289_v15  ;;  %v1241_v31 = vadd.f32 %v2001_v37, %v1227_v18  ;;  %v1228_v32 = vmul.f32 %v1999_v33, %v1214_v22  ;;  %v1256_v34 = vrot.slane %v1250_v23, 3  ;;  %v2387_v22 = vld [vmem:[%s3295_s9] sm:$0xff]   ;;  %v2388_v23 = vld [vmem:[%s3295_s9 + $0x8] sm:$0xff]  }
 0x41e   : > { %2219 = vmatprep.subr.bf16.mxu1 %v2387_v22 }
 0x41f   : > { %v1300_v12 = vrot.slane %v1294_v30, 7  ;;  %v1247_v35 = vmul.f32 %v2891_v20, %v1241_v31  ;;  %v1242_v36 = vadd.f32 %v2001_v37, %v1228_v32  ;;  %v1257_v38 = vsel %vm983_vm9, %v1255_v24, %v1256_v34  ;;  %v1315_v48 = vld [vmem:[#allocation2] sm:$0xfc]  ;;  %2220 = vmatpush3.bf16.msra.mxu1 %v2387_v22  ;;  %v2389_v24 = vld [vmem:[%s3295_s9 + $0x10] sm:$0xff]   ;;  %v2390_v30 = vld [vmem:[%s3295_s9 + $0x18] sm:$0xff]  }
 0x420   : > { %v1313_v37 = vld [vmem:[#allocation2] sm:$0xfe]  ;;  %2221 = vmatprep.subr.bf16.mxu1 %v2388_v23 }
 0x421   : > { %v1301_v29 = vsel %vm753_vm7, %v1299_v4, %v1300_v12  ;;  %v1248_v39 = vmul.f32 %v2894_v21, %v1242_v36  ;;  %v1251_v41 = vpack.c.bf16 %v1247_v35, %v1247_v35  ;;  %v1291_v44 = vadd.f32 %v1278_v40, %v1247_v35  ;;  %v1310_v4 = vld [vmem:[#allocation2] sm:$0xff] }
 0x422   : > { %1308 = vst.msk [vmem:[#allocation2 + $0x8] sm:$0xff] %vm764_vm8, %v1301_v29  ;;  %v1333_v21 = vrot.slane %v1315_v48, 2  ;;  %v1320_v54 = vrot.slane %v1313_v37, 1  ;;  %v2391_v31 = vld [vmem:[%s3295_s9 + $0x20] sm:$0xff]  }
 0x423   : > { %v1292_v25 = vadd.f32 %v1280_v17, %v1248_v39  ;;  %v1258_v45 = vrot.slane %v1251_v41, 3  ;;  %2222 = vmatpush3.bf16.msra.mxu1 %v2388_v23  ;;  %v2015_v32 = vld [vmem:[%s3292_s6 + $0x2] ss:$0 sm:$0xff] }
 0x424   : > { %2223 = vmatprep.subr.bf16.mxu1 %v2389_v24  ;;  %v2026_v36 = vld [vmem:[%s3293_s7 + $0x2] ss:$0 sm:$0xff] }
 0x425   : > { %v1295_v33 = vpack.c.bf16 %v1292_v25, %v1291_v44  ;;  %v1259_v46 = vsel %vm983_vm9, %v1256_v34, %v1258_v45  ;;  %v2028_v40 = vld [vmem:[%s3294_s8 + $0x2] ss:$0 sm:$0xff] }
 0x427   : > { %v1302_v47 = vrot.slane %v1295_v33, 7  ;;  %2224 = vmatpush3.bf16.msra.mxu1 %v2389_v24  ;;  %v1534_v24 = vpack.c.bf16 %v2908_v27, %v2908_v27 }
 0x428   : > { %2225 = vmatprep.subr.bf16.mxu1 %v2390_v30 }
 0x429   : > { %v1303_v49 = vsel %vm753_vm7, %v1300_v12, %v1302_v47  ;;  %v1311_v50 = vld [vmem:[#allocation2 + $0x8] sm:$0xff] }
 0x42a   : > { %1309 = vst.msk [vmem:[#allocation2 + $0x10] sm:$0x7f] %vm766_vm10, %v1303_v49  ;;  %v1334_v53 = vrot.slane %v1311_v50, 2  ;;  %v1321_v55 = vrot.slane %v1311_v50, 1 }
 0x42b   : > { %2226 = vmatpush3.bf16.msra.mxu1 %v2390_v30 }
 0x42c   : > { %v1335_v56 = vsel %vm792_vm12, %v1333_v21, %v1334_v53  ;;  %v1322_v57 = vsel %vm778_vm11, %v1320_v54, %v1321_v55  ;;  %2227 = vmatprep.subr.bf16.mxu1 %v2391_v31 }
 0x42d   : > { %1338 = vrot.lane.b32.xlu1 %v1335_v56, %s3314_s24  ;;  %1325 = vrot.lane.b32.xlu0 %v1322_v57, %s2550_s28 }
 0x42f   : > { %2228 = vmatpush3.bf16.msra.mxu1 %v2391_v31  ;;  %v1539_v31 = vrot.slane %v1534_v24, 3 }
 0x431   : > { %v1316_v58 = vld [vmem:[#allocation2 + $0x10] sm:$0xff] }
 0x432   : > { %v1314_v59 = vld [vmem:[#allocation2 + $0x10] sm:$0x7f]  ;;  %v1336_v60 = vrot.slane %v1316_v58, 2  ;;  %v2392_v58 = vld [vmem:[%s3295_s9 + $0x28] sm:$0xff]  }
 0x433   : > { %v1323_v61 = vrot.slane %v1314_v59, 1  ;;  %v1312_v11 = vld [vmem:[#allocation2 + $0x10] sm:$0x3f]  ;;  %2229 = vmatprep.subr.bf16.mxu1 %v2392_v58 }
 0x434   : > { %v1337_v62 = vsel %vm792_vm12, %v1334_v53, %v1336_v60  ;;  %2230 = vmatpush3.bf16.msra.mxu1 %v2392_v58 }
 0x435   : > { %v1324_v63 = vsel %vm778_vm11, %v1321_v55, %v1323_v61  ;;  %1340 = vrot.lane.b32.xlu1 %v1337_v62, %s3314_s24 }
 0x436   : > { %1327 = vrot.lane.b32.xlu0 %v1324_v63, %s2550_s28 }
 0x439   : > { %1342 = vrot.lane.b32.xlu1 %v1336_v60, %s3314_s24 }
 0x43a   : > { %1329 = vrot.lane.b32.xlu0 %v1323_v61, %s2550_s28 }
 0x43d   : > { %1262 = vrot.lane.b32.xlu1 %v1259_v46, %s2550_s28 }
 0x43e   : > { %1260 = vrot.lane.b32.xlu0 %v1257_v38, %s2550_s28  ;;  %s3348_s28 = sld [smem:[#allocation26_spill]] }
 0x444   : > { %v2029_v27 = vld [vmem:[%s3348_s28] ss:$0 sm:$0xff]  ;;  %s3177_s28 = scalar_lea.vmem [#allocation6], %s3352_s17 }
 0x49f   : > { %v1339_v3 = vpop.permute.xlu1 %1338  ;;  %v1326_v52 = vpop.permute.xlu0 %1325 }
 0x4a0   : > { %v1346_v5 = vsel %vm764_vm8, %v1310_v4, %v1326_v52 }
 0x4a1   : > { %v1354_v51 = vsel %vm813_vm13, %v1346_v5, %v1339_v3 }
 0x4a2   : > { %2208 = vmatmul.mubr.msk.bf16.vlgmr.msra.gmra.mrb[12].mxu0 %vm875_vm14, %v1354_v51 }
 0x4a3   : > { %2211 = vmatprep.mubr.msk.bf16.mxu0 %vm2548_vm0, %v2547_v0 }
 0x4a7   : > { %v1341_v8 = vpop.permute.xlu1 %1340 }
 0x4a8   : > { %v1328_v9 = vpop.permute.xlu0 %1327 }
 0x4a9   : > { %v1349_v28 = vsel %vm764_vm8, %v1311_v50, %v1328_v9  ;;  %v2393_v9 = vld [vmem:[%s3295_s9 + $0x30] sm:$0xff]  }
 0x4aa   : > { %v1356_v6 = vsel %vm813_vm13, %v1349_v28, %v1341_v8  ;;  %2231 = vmatprep.subr.bf16.mxu1 %v2393_v9 }
 0x4ab   : > { %2212 = vmatmul.mubr.msk.bf16.gmra.mrb[16].mxu0 %vm875_vm14, %v1356_v6  ;;  %v1343_v7 = vpop.permute.xlu1 %1342  ;;  %2232 = vmatpush3.bf16.msra.mxu1 %v2393_v9 }
 0x4ac   : > { %v1330_v10 = vpop.permute.xlu0 %1329  ;;  %2215 = vmatprep.mubr.msk.bf16.mxu0 %vm2548_vm0, %v2547_v0 }
 0x4ad   : > { %v1352_v14 = vsel %vm764_vm8, %v1312_v11, %v1330_v10 }
 0x4ae   : > { %v1358_v18 = vsel %vm813_vm13, %v1352_v14, %v1343_v7  ;;  %v2394_v7 = vld [vmem:[%s3295_s9 + $0x38] sm:$0xff]  }
 0x4af   : > { %v1263_v15 = vpop.permute.xlu1 %1262  ;;  %2233 = vmatprep.subr.bf16.mxu1 %v2394_v7 }
 0x4b0   : > { %v1261_v16 = vpop.permute.xlu0 %1260  ;;  %1268 = vst.msk [vmem:[#allocation3 + $0x8] sm:$0xff] %vm1266_vm15, %v1263_v15  ;;  %2234 = vmatpush3.bf16.msra.mxu1 %v2394_v7 }
 0x4b1   : > { %1267 = vst.msk [vmem:[#allocation3] sm:$0xff] %vm1266_vm15, %v1261_v16 }
 0x4b3   : > { %2216 = vmatmul.mubr.msk.bf16.gmra.mrb[20].mxu0 %vm875_vm14, %v1358_v18 }
 0x4b4   : > { %2243 = vmatprep.mubr.msk.bf16.mxu0 %vm2548_vm0, %v2547_v0  ;;  %vm1531_vm0 = vcmask 785920  }
 0x575   : > { %v1456_v34 = vpop.f32.mrb[12].mxu0 }
 0x576   : > { %v1457_v12 = vadd.f32 %v2015_v32, %v1456_v34  ;;  %v2209_v35 = vpop.f32.mrb[13].mxu0  ;;  %v1540_v34 = vsel %vm983_vm9, %v1537_v19, %v1539_v31 }
 0x577   : > { %v1459_v38 = vpop.f32.mrb[14].mxu0 }
 0x578   : > { %v1478_v29 = vmax.f32 %v1457_v12, 0.0  ;;  %v1460_v39 = vadd.f32 %v2015_v32, %v1459_v38  ;;  %v2210_v17 = vpop.f32.mrb[15].mxu0 }
 0x579   : > { %v1703_v17 = vrot.slane %v2866_v1, 6 }
 0x57a   : > { %v1491_v41 = vmul.f32 %v2026_v36, %v1478_v29  ;;  %v1479_v44 = vmax.f32 %v1460_v39, 0.0 }
 0x57c   : > { %v1504_v25 = vadd.f32 %v2028_v40, %v1491_v41  ;;  %v1492_v45 = vmul.f32 %v2026_v36, %v1479_v44  ;;  %v2039_v44 = vld [vmem:[%s3351_s14] ss:$0 sm:$0xff] }
 0x57e   : > { %v1464_v33 = vpop.f32.mrb[16].mxu0  ;;  %v1505_v46 = vadd.f32 %v2028_v40, %v1492_v45  ;;  %v1509_v49 = vmul.f32 %v2845_v42, %v1504_v25  ;;  %v1705_v25 = vrot.slane %v2869_v2, 6 }
 0x57f   : > { %v1465_v47 = vadd.f32 %v2015_v32, %v1464_v33  ;;  %v2213_v48 = vpop.f32.mrb[17].mxu0  ;;  %v1707_v33 = vrot.slane %v2891_v20, 6 }
 0x580   : > { %v1467_v37 = vpop.f32.mrb[18].mxu0  ;;  %v1510_v50 = vmul.f32 %v2848_v43, %v1505_v46  ;;  %v1700_v48 = vrot.slane %v2845_v42, 6 }
 0x581   : > { %v1480_v21 = vmax.f32 %v1465_v47, 0.0  ;;  %v1468_v53 = vadd.f32 %v2015_v32, %v1467_v37  ;;  %v2214_v54 = vpop.f32.mrb[19].mxu0  ;;  %v1701_v37 = vrot.slane %v2848_v43, 6 }
 0x582   : > { %v1514_v57 = vpack.c.bf16 %v1510_v50, %v1509_v49  ;;  %v1706_v54 = vsel %vm1699_vm2, %v1703_v17, %v1705_v25 }
 0x583   : > { %v1493_v55 = vmul.f32 %v2026_v36, %v1480_v21  ;;  %v1481_v56 = vmax.f32 %v1468_v53, 0.0  ;;  %v1704_v58 = vsel %vm1699_vm2, %v1701_v37, %v1703_v17 }
 0x584   : > { %v1520_v11 = vrot.slane %v1514_v57, 3 }
 0x585   : > { %v1506_v59 = vadd.f32 %v2028_v40, %v1493_v55  ;;  %v1494_v60 = vmul.f32 %v2026_v36, %v1481_v56 }
 0x586   : > { %v1472_v61 = vpop.f32.mrb[20].mxu0 }
 0x587   : > { %v1507_v62 = vadd.f32 %v2028_v40, %v1494_v60  ;;  %v1473_v63 = vadd.f32 %v2015_v32, %v1472_v61  ;;  %v2217_v3 = vpop.f32.mrb[21].mxu0  ;;  %v1511_v52 = vmul.f32 %v2866_v1, %v1506_v59 }
 0x588   : > { %v1475_v4 = vpop.f32.mrb[22].mxu0  ;;  %v2553_v3 = vmov 1065369472  }
 0x589   : > { %v1512_v5 = vmul.f32 %v2869_v2, %v1507_v62  ;;  %v1482_v51 = vmax.f32 %v1473_v63, 0.0  ;;  %v2218_v8 = vpop.f32.mrb[23].mxu0  ;;  %v1708_v2 = vsel %vm1699_vm2, %v1705_v25, %v1707_v33 }
 0x58a   : > { %v2554_v8 = vmov (!%p2045_p6), 0.0  }
 0x58b   : > { %v1495_v28 = vmul.f32 %v2026_v36, %v1482_v51  ;;  %v1515_v6 = vpack.c.bf16 %v1512_v5, %v1511_v52  ;;  %1784 = vst [vmem:[%s3177_s28] sm:$0x1] (!%p2045_p6), %v2554_v8 }
 0x58d   : > { %v1508_v10 = vadd.f32 %v2028_v40, %v1495_v28  ;;  %v1521_v14 = vrot.slane %v1515_v6, 3 }
 0x58f   : > { %v1513_v15 = vmul.f32 %v2891_v20, %v1508_v10  ;;  %v1522_v16 = vsel %vm983_vm9, %v1520_v11, %v1521_v14  ;;  %v1702_v20 = vsel %vm1699_vm2, %v1700_v48, %v1701_v37 }
 0x590   : > { %1525 = vrot.lane.b32.xlu0 %v1522_v16, %s3314_s24 }
 0x591   : > { %v1516_v18 = vpack.c.bf16 %v1513_v15, %v1513_v15 }
 0x593   : > { %v1523_v22 = vrot.slane %v1516_v18, 3 }
 0x595   : > { %v1524_v23 = vsel %vm983_vm9, %v1521_v14, %v1523_v22 }
 0x596   : > { %1527 = vrot.lane.b32.xlu1 %v1524_v23, %s3314_s24 }
 0x602   : > { %v1526_v30 = vpop.permute.xlu0 %1525 }
 0x603   : > { %1532 = vst.msk [vmem:[#allocation3] sm:$0xff] %vm1531_vm0, %v1526_v30 }
 0x604   : > { %1544 = vst.msk [vmem:[#allocation3] sm:$0xff] %vm1543_vm1, %v2905_v26  ;;  %v2038_v26 = vld [vmem:[%s3349_s16] ss:$0 sm:$0xff] }
 0x608   : > { %v1528_v32 = vpop.permute.xlu1 %1527 }
 0x609   : > { %1533 = vst.msk [vmem:[#allocation3 + $0x8] sm:$0xff] %vm1531_vm0, %v1528_v32 }
 0x60a   : > { %1545 = vst.msk [vmem:[#allocation3 + $0x8] sm:$0xff] %vm1543_vm1, %v1540_v34 }
 0x60b   : > { %v1546_v12 = vld [vmem:[#allocation3] sm:$0xff] }
 0x60c   : > { %2235 = vmatprep.mubr.bf16.mxu1 %v1546_v12 }
 0x611   : > { %v1547_v35 = vld [vmem:[#allocation3 + $0x8] sm:$0xff] }
 0x612   : > { %2236 = vmatmul.mubr.bf16.vlgmr.msra.gmra.mrb[24].mxu1 %v1547_v35 }
 0x6e5   : > { %v2237_v36 = vpop.f32.mrb[24].mxu1 }
 0x6e6   : > { %v1662_v38 = vadd.f32 %v2237_v36, %v2029_v27  ;;  %v1653_v29 = vpop.f32.mrb[25].mxu1 }
 0x6e7   : > { %v1654_v13 = vadd.f32 %v2029_v27, %v1653_v29  ;;  %v2238_v39 = vpop.f32.mrb[26].mxu1 }
 0x6e8   : > { %v1670_v19 = vmax.f32 %v1662_v38, 0.0  ;;  %v1665_v40 = vadd.f32 %v2238_v39, %v2029_v27  ;;  %v1656_v41 = vpop.f32.mrb[27].mxu1 }
 0x6e9   : > { %v1668_v45 = vmax.f32 %v1654_v13, 0.0  ;;  %v1657_v46 = vadd.f32 %v2029_v27, %v1656_v41 }
 0x6ea   : > { %v1681_v47 = vmul.f32 %v2038_v26, %v1670_v19  ;;  %v1671_v49 = vmax.f32 %v1665_v40, 0.0 }
 0x6eb   : > { %v1679_v1 = vmul.f32 %v2038_v26, %v1668_v45  ;;  %v1669_v50 = vmax.f32 %v1657_v46, 0.0 }
 0x6ec   : > { %v1692_v21 = vadd.f32 %v2039_v44, %v1681_v47  ;;  %v1682_v53 = vmul.f32 %v2038_v26, %v1671_v49 }
 0x6ed   : > { %v1690_v55 = vadd.f32 %v2039_v44, %v1679_v1  ;;  %v1680_v56 = vmul.f32 %v2038_v26, %v1669_v50 }
 0x6ee   : > { %v1693_v57 = vadd.f32 %v2039_v44, %v1682_v53  ;;  %v1715_v43 = vmul.f32 %v1706_v54, %v1692_v21 }
 0x6ef   : > { %v1691_v42 = vadd.f32 %v2039_v44, %v1680_v56  ;;  %v1713_v60 = vmul.f32 %v1702_v20, %v1690_v55 }
 0x6f0   : > { %v1716_v59 = vmul.f32 %v1708_v2, %v1693_v57 }
 0x6f1   : > { %v1714_v61 = vmul.f32 %v1704_v58, %v1691_v42 }
 0x6f2   : > { %v1718_v62 = vpack.c.bf16 %v1716_v59, %v1715_v43 }
 0x6f3   : > { %v1717_v63 = vpack.c.bf16 %v1714_v61, %v1713_v60 }
 0x6f4   : > { %2067 = vst [vmem:[%s488_s12 + $0x8] sm:$0xff] %v1718_v62  }
 0x6f5   : > { %2061 = vst [vmem:[%s488_s12] sm:$0xff] %v1717_v63   ;;  %2240 = vmatpush3.bf16.msra.mxu0 %v1717_v63 }
 0x6f6   : > { %2241 = vmatprep.subr.bf16.mxu0 %v2547_v0 }
 0x6f9   : > { %2242 = vmatpush3.bf16.msra.mxu0 %v1718_v62 }
 0x6fc   : > { %2244 = vmatmul.mubr.msk.bf16.vlgmr.msra.gmra.mrb[24].mxu0 %vm764_vm8, %v2553_v3 }
 0x7cc   : > { %1783 = sbr.rel (%p2045_p6) target bundleno = 2003 (0x7d3), region = 76 }
 0x7cf   : > { %v1774_v4 = vpop.f32.mrb[24].mxu0 }
 0x7d0   : > { %v2245_v52 = vpop.f32.mrb[25].mxu0 }
 0x7d1   : > { %v1777_v5 = vpop.f32.mrb[26].mxu0 }
 0x7d2   : > { %v2246_v51 = vpop.f32.mrb[27].mxu0 }
 0x7d3 PF: > { %s3353_s18 = sld [smem:[#allocation12_spill]]  ;;  %v1785_v0 = vld [vmem:[%s3177_s28] sm:$0x1]  ;;  %s2047_s16 = sshll.u32 %s2529_s19, 2 }
 0x7d4   : > { %v1786_v9 = vadd.f32 %v1785_v0, %v1774_v4  ;;  %s2048_s21 = sshll.u32 %s2533_s20, 3  ;;  %s1808_s15 = sshll.u32 %s488_s12, 4  ;;  %s3184_s15 = int_to_ptr.vmem [resolvable:$true] %s1808_s15 }
 0x7d5   : > { %s1805_s11 = sadd.s32 %s2048_s21, %s2047_s16  ;;  %s3355_s24 = sld [smem:[#allocation29_spill]] }
 0x7d6   : > { %1787 = vst [vmem:[%s3177_s28] sm:$0x1] %v1786_v9  ;;  %s2049_s14 = sshll.u32 %s1805_s11, 6  ;;  %s2395_s19 = scalar_lea.vmem %s3184_s15, 256 }
 0x7d7   : > { %p2396_p8 = scmp.ne.s32.totalorder %s3184_s15, %s2395_s19  ;;  %s2555_s12 = smov [#allocation4]  }
 0x7d8   : > { %s2399_s16 = sshll.u32 %s2555_s12, 4  ;;  %s2400_s16 = int_to_ptr.vmem [resolvable:$false] %s2399_s16 }
 0x7d9   : > { %s3356_s0 = sand.u32 1, %s3353_s18   ;;  %p2397_p9 = pnand %p2396_p8, %p2706_p3 }
 0x7da   : > { %s3194_s1 = scalar_lea.sflag [#allocation5], %s3356_s0  ;;  %s2401_s21 = scalar_lea.vmem %s2400_s16, 512 }
 0x7db   : > { %s3190_s22 = scalar_lea.hbm %s3355_s24, %s2049_s14  ;;  %p2398_p10 = pneg %p2397_p9 }
 0x7dc   : > { %p2402_p11 = scmp.lt.s32.totalorder %s3184_s15, %s2400_s16  ;;  %p2403_p0 = scmp.lt.s32.totalorder %s2401_s21, %s2395_s19 }
 0x7de   : > { %p2404_p1 = por %p2403_p0, %p2402_p11 }
 0x7e0   : > { %p2405_p4 = pnand %p2404_p1, %p2398_p10 }
 0x7e2   : > { %2408 = shalt.err (!%p2405_p4)
}
 0x7e3   : > { %s2409_s0 = scalar_lea.hbm %s3190_s22, 256  ;;  %s2413_s14 = scalar_lea.hbm %s3355_s24, 1024 }
 0x7e4   : > { %p2410_p2 = scmp.ne.s32.totalorder %s3190_s22, %s2409_s0  ;;  %p2414_p8 = scmp.lt.u32.totalorder %s3190_s22, %s3355_s24 }
 0x7e5   : > { %p2415_p9 = scmp.lt.u32.totalorder %s2413_s14, %s2409_s0  ;;  %p2417_p11 = scmp.lt.u32.totalorder %s2409_s0, %s3190_s22 }
 0x7e6   : > { %p2411_p5 = pnand %p2410_p2, %p2706_p3 }
 0x7e7   : > { %p2416_p10 = por %p2415_p9, %p2414_p8 }
 0x7e8   : > { %p2412_p6 = pneg %p2411_p5 }
 0x7e9   : > { %p2418_p0 = por %p2417_p11, %p2416_p10 }
 0x7eb   : > { %p2419_p1 = pnand %p2418_p0, %p2412_p6 }
 0x7ed   : > { %2422 = shalt.err (!%p2419_p1)
}
 0x7ee   : > { %s2556_s19 = smov 4   ;;  %s3357_s12 = smov 64  }
 0x7ef   : > { %2249 = dma.vmem_to_hbm [thread:$0]  (%p2706_p3), %s3184_s15, 256, %s3190_s22, %s3194_s1, %s3357_s12, %s3357_s12, %s2556_s19  }
 0x7f0   : > { %s2050_s16 = sshll.u32 %s2533_s20, 4  ;;  %s1824_s21 = sshll.u32 %s3177_s28, 4  ;;  %s1825_s21 = int_to_ptr.vmem [resolvable:$true] %s1824_s21 }
 0x7f1   : > { %s3358_s11 = sld [smem:[#allocation30_spill]]  ;;  %s3359_s27 = sand.u32 1, %s2509_s30  }
 0x7f2   : > { %s1794_s13 = scalar_lea.sflag [#allocation7], %s3359_s27  ;;  %s2423_s17 = scalar_lea.vmem %s1825_s21, 16 }
 0x7f3   : > { %p2424_p4 = scmp.ne.s32.totalorder %s1825_s21, %s2423_s17  ;;  %s2557_s2 = smov [#allocation6]  }
 0x7f4   : > { %s2427_s3 = sshll.u32 %s2557_s2, 4  ;;  %s2428_s3 = int_to_ptr.vmem [resolvable:$false] %s2427_s3 }
 0x7f5   : > { %p2425_p2 = pnand %p2424_p4, %p2733_p12  ;;  %s2429_s4 = scalar_lea.vmem %s2428_s3, 32 }
 0x7f6   : > { %p2430_p3 = scmp.lt.s32.totalorder %s1825_s21, %s2428_s3  ;;  %p2431_p6 = scmp.lt.s32.totalorder %s2429_s4, %s2423_s17 }
 0x7f7   : > { %s3225_s14 = scalar_lea.hbm %s3358_s11, %s2050_s16  ;;  %p2426_p5 = pneg %p2425_p2 }
 0x7f8   : > { %p2432_p8 = por %p2431_p6, %p2430_p3 }
 0x7fa   : > { %p2433_p9 = pnand %p2432_p8, %p2426_p5 }
 0x7fc   : > { %2436 = shalt.err (!%p2433_p9)
}
 0x7fd   : > { %s2437_s1 = scalar_lea.hbm %s3225_s14, 16  ;;  %s2441_s2 = scalar_lea.hbm %s3358_s11, 32 }
 0x7fe   : > { %p2438_p10 = scmp.ne.s32.totalorder %s3225_s14, %s2437_s1  ;;  %p2442_p1 = scmp.lt.u32.totalorder %s3225_s14, %s3358_s11 }
 0x7ff   : > { %p2443_p4 = scmp.lt.u32.totalorder %s2441_s2, %s2437_s1  ;;  %p2445_p5 = scmp.lt.u32.totalorder %s2437_s1, %s3225_s14 }
 0x800   : > { %p2439_p11 = pnand %p2438_p10, %p2733_p12 }
 0x801   : > { %p2444_p2 = por %p2443_p4, %p2442_p1 }
 0x802   : > { %p2440_p0 = pneg %p2439_p11 }
 0x803   : > { %p2446_p3 = por %p2445_p5, %p2444_p2 }
 0x805   : > { %p2447_p6 = pnand %p2446_p3, %p2440_p0 }
 0x807   : > { %2450 = shalt.err (!%p2447_p6)
}
 0x808   : > { %2250 = dma.vmem_to_hbm [thread:$0]  (%p2733_p12), %s1825_s21, 16, %s3225_s14, %s1794_s13  }
 0x809 PF: > { %s3360_s4 = sld [smem:[#allocation11_spill]]  ;;  %p2260_p8 = scmp.ge.s32.totalorder %s2545_s23, 2 }
 0x80b   : > { %p2254_p9 = pnand %p2260_p8, %p2721_p7 }
 0x80f   : > { %s1836_s15 = sand.u32 1, %s3360_s4  }
 0x810   : > { %s1837_s19 = scalar_lea.sflag [#allocation5], %s1836_s15 }
 0x811   : > { %2496 = dma.done.wait (!%p2254_p9), %s1837_s19, 256  }
 0x812   : > { %2498 = vsyncadd (!%p2254_p9), %s1837_s19, 4294967040  ;;  %s1845_s12 = sand.u32 1, %s2505_s29   ;;  %p2257_p10 = pnand %p2260_p8, %p2745_p13 }
 0x813   : > { %s1846_s16 = scalar_lea.sflag [#allocation7], %s1845_s12 }
 0x814   : > { %2500 = dma.done.wait (!%p2257_p10), %s1846_s16, 16  }
 0x815   : > { %2502 = vsyncadd (!%p2257_p10), %s1846_s16, 4294967280  ;;  %s31_s23 = sadd.s32 1, %s2545_s23   ;;  %s3361_s25 = sld [smem:[#allocation10_spill]] }
 0x816   : > { %p28_p12 = scmp.ge.s32.totalorder %s31_s23, 6   ;;  %s3362_s15 = sld [smem:[#allocation19_spill]] }
 0x817   : > { %s3363_s16 = sld [smem:[#allocation12_spill]]  ;;  %s3364_s17 = sld [smem:[#allocation13_spill]] }
 0x818   : > { %s3365_s18 = sld [smem:[#allocation20_spill]]  ;;  %s3366_s19 = sld [smem:[#allocation14_spill]] }
 0x819   : > { %s3367_s20 = sld [smem:[#allocation15_spill]]  ;;  %s3368_s21 = sld [smem:[#allocation16_spill]] }
 0x81a   : > { %s3369_s22 = sld [smem:[#allocation18_spill]]  ;;  %s3370_s29 = smov %s2509_s30 }
 0x81b   : > { %s3371_s30 = smov %s3361_s25  ;;  %30 = sbr.rel (!%p28_p12) target bundleno = 20 (0x14), region = 136 }
 0x822   :  { %1850 = vsyncpa [#allocation5], 1 }
 0x823   :  { %1852 = vsyncpa [#allocation5 + $0x1], 1 }
 0x824   :  { %1853 = vsyncpa [#allocation7], 1 }
 0x825   :  { %1855 = vsyncpa [#allocation7 + $0x1], 1 }

</bundles_post_ra>
